<compile_context>
chip_gen: v5e
topology: v5e:2x2
jax: 0.10.0
libtpu: 0.0.40
codegen_flags: <defaults>
</compile_context>

<pallas_src>
import functools

import jax
import jax.numpy as jnp
import numpy as np
from jax.experimental import pallas as pl
from jax.experimental.pallas import tpu as pltpu

NEG_SLOPE = 0.01   # torch.nn.LeakyReLU default
LANE = 128
SUB = 16           # bf16 sublane packing


def _round_up(x, m):
    return (x + m - 1) // m * m


# ------------------------------ kernel ----------------------------------------

def flatvae_kernel(enc_layers, head_layers, dec_layers, z_pad,
                   x_ref, eps_ref, w_ref, b_ref, out_ref):
    """x_ref: (Bt, in_pad) bf16; eps_ref: (Bt, z_pad) f32;
    w_ref: (R, Wmax) bf16 packed weights; b_ref: (L, Wmax) f32 packed biases."""

    def mlp(h, layers):
        n = len(layers)
        for i, (r0, bi, pi, po) in enumerate(layers):
            w = w_ref[r0:r0 + pi, :po]            # static, tile-aligned slice (bf16)
            b = b_ref[bi:bi + 1, :po]             # (1, po) f32
            h = jnp.dot(h.astype(jnp.bfloat16), w,
                        preferred_element_type=jnp.float32) + b
            if i < n - 1:
                # LeakyReLU in f32, then carry bf16 (== what the next dot casts to).
                h = jnp.maximum(h, NEG_SLOPE * h).astype(jnp.bfloat16)
        return h                                   # last layer stays f32

    h = mlp(x_ref[...], enc_layers)                # encoder
    ml = mlp(h, head_layers)                       # fused head -> [mu | logvar]
    mu = ml[:, :z_pad]
    logvar = ml[:, z_pad:]
    std = jnp.exp(0.5 * logvar)                    # f32 (padded: exp(0)=1, eps=0)
    z = mu + std * eps_ref[...]                    # reparameterization (f32)
    y = mlp(z, dec_layers)                         # decoder
    out_ref[...] = y.astype(out_ref.dtype)


# ----------------- one-time parameter packing (host side, hoisted) -------------

def prepare_flatvae_params(enc_params, mu_params, lv_params, dec_params):
    """Pad all Linear layers to lane-aligned shapes, fuse mu/logvar heads, and
    pack everything into one bf16 weight slab + one f32 bias slab.

    Returns (w_slab bf16 (R, Wmax), b_slab f32 (L, Wmax), meta) where meta is a
    hashable nested tuple of static ints (layer descriptors + dims + flops)."""

    def pad_wb(w, b):
        w = np.asarray(w, np.float32)
        b = np.asarray(b, np.float32).reshape(-1)
        fi, fo = w.shape
        pi, po = _round_up(fi, LANE), _round_up(fo, LANE)
        wp = np.zeros((pi, po), np.float32); wp[:fi, :fo] = w
        bp = np.zeros((po,), np.float32);    bp[:fo] = b
        return wp, bp

    def pad_mlp(params):
        return [pad_wb(params[2 * i], params[2 * i + 1])
                for i in range(len(params) // 2)]

    def fuse_heads(mu_p, lv_p):
        # Layer 0 shares input h:      W0 = [pad(Wmu0) | pad(Wlv0)]
        # Layers i>0 block-diagonal:   Wi = diag(pad(Wmui), pad(Wlvi))
        # Output of last layer is [mu_pad | logvar_pad].
        out = []
        n = len(mu_p) // 2
        for i in range(n):
            wm = np.asarray(mu_p[2 * i], np.float32)
            bm = np.asarray(mu_p[2 * i + 1], np.float32).reshape(-1)
            wl = np.asarray(lv_p[2 * i], np.float32)
            bl = np.asarray(lv_p[2 * i + 1], np.float32).reshape(-1)
            fi, fo = wm.shape
            pi, po = _round_up(fi, LANE), _round_up(fo, LANE)
            if i == 0:
                w = np.zeros((pi, 2 * po), np.float32)
                w[:fi, :fo] = wm; w[:fi, po:po + fo] = wl
            else:
                w = np.zeros((2 * pi, 2 * po), np.float32)
                w[:fi, :fo] = wm; w[pi:pi + fi, po:po + fo] = wl
            b = np.zeros((2 * po,), np.float32)
            b[:fo] = bm; b[po:po + fo] = bl
            out.append((w, b))
        return out

    enc = pad_mlp(enc_params)
    head = fuse_heads(mu_params, lv_params)
    dec = pad_mlp(dec_params)

    groups = (enc, head, dec)
    all_layers = enc + head + dec
    wmax = max(w.shape[1] for w, _ in all_layers)
    total_rows = sum(w.shape[0] for w, _ in all_layers)
    n_layers = len(all_layers)

    w_slab = np.zeros((total_rows, wmax), np.float32)
    b_slab = np.zeros((n_layers, wmax), np.float32)

    meta_groups = []
    row, li = 0, 0
    for group in groups:
        g_meta = []
        for w, b in group:
            pi, po = w.shape
            w_slab[row:row + pi, :po] = w
            b_slab[li, :po] = b
            g_meta.append((row, li, pi, po))
            row += pi
            li += 1
        meta_groups.append(tuple(g_meta))

    in_ch = int(np.asarray(enc_params[0]).shape[0])
    z_dim = int(np.asarray(mu_params[-2]).shape[1])
    in_pad = _round_up(in_ch, LANE)
    z_pad = _round_up(z_dim, LANE)

    # Unpadded flops per example (advisory, for pl.CostEstimate).
    flops_per_ex = 0
    for p in (enc_params, mu_params, lv_params, dec_params):
        for i in range(len(p) // 2):
            fi, fo = np.asarray(p[2 * i]).shape
            flops_per_ex += 2 * int(fi) * int(fo)

    meta = (tuple(meta_groups), in_ch, z_dim, in_pad, z_pad, flops_per_ex)
    return (jnp.asarray(w_slab, jnp.bfloat16),
            jnp.asarray(b_slab, jnp.float32),
            meta)


# ----------------------- forward (wrap in jax.jit) -----------------------------

def flatvae_forward(x, eps, w_slab, b_slab, meta, max_block_b=512):
    (enc_l, head_l, dec_l), in_ch, z_dim, in_pad, z_pad, flops_per_ex = meta
    B = x.shape[0]

    # Adaptive batch tiling: pad only to multiples of 16 (bf16 sublane pack),
    # equalize tiles across grid steps instead of rounding B up to max_block_b.
    max_block_b = max(SUB, _round_up(max_block_b, SUB))
    B16 = _round_up(B, SUB)
    n_steps = max(1, -(-B16 // max_block_b))
    block_b = _round_up(-(-B16 // n_steps), SUB)
    B_pad = n_steps * block_b

    # Lane-dense zero-padded activations (x in bf16: matches the bf16 matmul
    # operand cast in the reference; eps stays f32 for the f32 reparam math).
    x_p = jnp.zeros((B_pad, in_pad), jnp.bfloat16).at[:B, :in_ch].set(
        x.astype(jnp.bfloat16))
    eps_p = jnp.zeros((B_pad, z_pad), jnp.float32).at[:B, :z_dim].set(
        eps.astype(jnp.float32))

    kernel = functools.partial(flatvae_kernel, enc_l, head_l, dec_l, z_pad)

    grid = (B_pad // block_b,)
    in_specs = [
        pl.BlockSpec((block_b, in_pad), lambda i: (i, 0)),      # x tile
        pl.BlockSpec((block_b, z_pad), lambda i: (i, 0)),       # eps tile
        # Constant index_map -> packed slabs are DMA'd once, not per step.
        pl.BlockSpec(tuple(w_slab.shape), lambda i: (0, 0)),
        pl.BlockSpec(tuple(b_slab.shape), lambda i: (0, 0)),
    ]
    out_spec = pl.BlockSpec((block_b, in_pad), lambda i: (i, 0))

    cost = pl.CostEstimate(
        flops=flops_per_ex * B,
        transcendentals=B * z_dim,
        bytes_accessed=int(B * (2 * in_ch + 4 * z_dim + 4 * in_ch)
                           + w_slab.size * 2 + b_slab.size * 4))

    out_padded = pl.pallas_call(
        kernel,
        out_shape=jax.ShapeDtypeStruct((B_pad, in_pad), jnp.float32),
        grid_spec=pltpu.PrefetchScalarGridSpec(
            num_scalar_prefetch=0,
            grid=grid,
            in_specs=in_specs,
            out_specs=out_spec),
        compiler_params=pltpu.CompilerParams(
            dimension_semantics=("parallel",)),
        cost_estimate=cost,
    )(x_p, eps_p, w_slab, b_slab)

    return out_padded[:B, :in_ch].astype(x.dtype)


# ----------------------- parameter construction (deterministic) ----------------

def _init_linear(key, fan_in, fan_out):
    # PyTorch nn.Linear default init: U(-1/sqrt(fan_in), 1/sqrt(fan_in)).
    kw, kb = jax.random.split(key)
    bound = 1.0 / np.sqrt(fan_in)
    w = jax.random.uniform(kw, (fan_in, fan_out), jnp.float32, -bound, bound)
    b = jax.random.uniform(kb, (1, fan_out), jnp.float32, -bound, bound)
    return w, b


def make_mlp_params(key, dim, depth, hidden_dim, out_dim):
    """BasicFullyConnectedNet(dim, depth, hidden_dim, out_dim): depth+2 Linears."""
    dims = [dim] + [hidden_dim] * (depth + 1) + [out_dim]
    keys = jax.random.split(key, len(dims) - 1)
    params = []
    for k, fan_in, fan_out in zip(keys, dims[:-1], dims[1:]):
        w, b = _init_linear(k, fan_in, fan_out)
        params += [w, b]
    return params


# ----------------------- pure-JAX reference (same bf16 matmul operands) --------

def _mlp_ref(h, params):
    n = len(params) // 2
    for i in range(n):
        w = params[2 * i].astype(jnp.bfloat16)
        h = jnp.dot(h.astype(jnp.bfloat16), w,
                    preferred_element_type=jnp.float32) + params[2 * i + 1]
        if i < n - 1:
            h = jnp.where(h > 0, h, NEG_SLOPE * h)
    return h


def flatvae_ref(x, eps, enc_p, mu_p, lv_p, dec_p):
    h = _mlp_ref(x.astype(jnp.float32), enc_p)
    mu = _mlp_ref(h, mu_p)
    logvar = _mlp_ref(h, lv_p)
    z = mu + jnp.exp(0.5 * logvar) * eps
    return _mlp_ref(z, dec_p)


if __name__ == "__main__":
    # Small config consistent with FlatVAE.__init__ (dequant_biggan scaled down):
    # in_channels=16, mid_channels=32, z_dim=8, n_down=2, use_bn=False,
    # be_deterministic=False.
    n_down, z_dim, in_channels, mid_channels = 2, 8, 16, 32
    B = 100   # awkward batch: exercises adaptive tiling (2 parallel grid steps)

    key = jax.random.PRNGKey(0)
    k_enc, k_mu, k_lv, k_dec, k_x, k_eps = jax.random.split(key, 6)

    enc_p = make_mlp_params(k_enc, in_channels, n_down, mid_channels, in_channels)
    mu_p = make_mlp_params(k_mu, in_channels, n_down, mid_channels, z_dim)
    lv_p = make_mlp_params(k_lv, in_channels, n_down, mid_channels, z_dim)
    dec_p = make_mlp_params(k_dec, z_dim, n_down + 1, mid_channels, in_channels)

    x = jax.random.normal(k_x, (B, in_channels), jnp.float32)
    eps = jax.random.normal(k_eps, (B, z_dim), jnp.float32)  # reparam noise
    # TODO(synk): eps could be generated in-kernel with pltpu.prng_* if bitwise
    # matching an externally supplied noise tensor is not required.

    # One-time packing/fusion (hoisted out of the per-call path), jitted forward.
    w_slab, b_slab, meta = prepare_flatvae_params(enc_p, mu_p, lv_p, dec_p)
    fwd = jax.jit(functools.partial(flatvae_forward, meta=meta, max_block_b=64))

    out = jax.block_until_ready(fwd(x, eps, w_slab, b_slab))

    ref = flatvae_ref(x, eps, enc_p, mu_p, lv_p, dec_p)
    np.testing.assert_allclose(np.asarray(out), np.asarray(ref),
                               rtol=2e-3, atol=2e-3)

    print("KERNEL_OK")
</pallas_src>

<mosaic_0001>
module attributes {stable_mosaic.version = 11 : i64} {
  func.func @flatvae_kernel(%arg0: i32, %arg1: memref<64x128xbf16, #tpu.memory_space<vmem>>, %arg2: memref<64x128xf32, #tpu.memory_space<vmem>>, %arg3: memref<2048x256xbf16, #tpu.memory_space<vmem>>, %arg4: memref<13x256xf32, #tpu.memory_space<vmem>>, %arg5: memref<64x128xf32, #tpu.memory_space<vmem>>) attributes {dimension_semantics = [#tpu.dimension_semantics<parallel>], iteration_bounds = array<i64: 2>, scalar_prefetch = 0 : i64, scratch_operands = 0 : i64, tpu.core_type = #tpu.core_type<tc>, window_params = [{transform_indices = @transform_0, window_bounds = array<i64: 64, 128>}, {transform_indices = @transform_1, window_bounds = array<i64: 64, 128>}, {pipeline_mode = #tpu.pipeline_mode<synchronous>, transform_indices = @transform_2, window_bounds = array<i64: 2048, 256>}, {pipeline_mode = #tpu.pipeline_mode<synchronous>, transform_indices = @transform_3, window_bounds = array<i64: 13, 256>}, {transform_indices = @transform_4, window_bounds = array<i64: 64, 128>}]} {
    %c0 = arith.constant 0 : index
    %c0_0 = arith.constant 0 : index
    %0 = vector.load %arg1[%c0, %c0_0] : memref<64x128xbf16, #tpu.memory_space<vmem>>, vector<64x128xbf16>
    %c0_1 = arith.constant 0 : index
    %c0_2 = arith.constant 0 : index
    %1 = vector.load %arg3[%c0_1, %c0_2] : memref<2048x256xbf16, #tpu.memory_space<vmem>>, vector<128x128xbf16>
    %c0_3 = arith.constant 0 : index
    %c0_4 = arith.constant 0 : index
    %2 = vector.load %arg4[%c0_3, %c0_4] : memref<13x256xf32, #tpu.memory_space<vmem>>, vector<1x128xf32>
    %cst = arith.constant dense<0.000000e+00> : vector<64x128xf32>
    %3 = tpu.matmul %0, %1, %cst {dimension_numbers = #tpu.dot_dimension_numbers<[1], [0], [0], [1], [0, 0, 1, 1], [], []>} : vector<64x128xbf16>, vector<128x128xbf16>, vector<64x128xf32> -> vector<64x128xf32>
    %4 = vector.broadcast %2 : vector<1x128xf32> to vector<64x128xf32>
    %5 = arith.addf %3, %4 : vector<64x128xf32>
    %cst_5 = arith.constant 0.00999999977 : f32
    %6 = vector.broadcast %cst_5 : f32 to vector<64x128xf32>
    %7 = arith.mulf %6, %5 : vector<64x128xf32>
    %8 = arith.maximumf %5, %7 : vector<64x128xf32>
    %9 = arith.truncf %8 : vector<64x128xf32> to vector<64x128xbf16>
    %c128 = arith.constant 128 : index
    %c0_6 = arith.constant 0 : index
    %10 = vector.load %arg3[%c128, %c0_6] : memref<2048x256xbf16, #tpu.memory_space<vmem>>, vector<128x128xbf16>
    %c1 = arith.constant 1 : index
    %c0_7 = arith.constant 0 : index
    %11 = vector.load %arg4[%c1, %c0_7] : memref<13x256xf32, #tpu.memory_space<vmem>>, vector<1x128xf32>
    %cst_8 = arith.constant dense<0.000000e+00> : vector<64x128xf32>
    %12 = tpu.matmul %9, %10, %cst_8 {dimension_numbers = #tpu.dot_dimension_numbers<[1], [0], [0], [1], [0, 0, 1, 1], [], []>} : vector<64x128xbf16>, vector<128x128xbf16>, vector<64x128xf32> -> vector<64x128xf32>
    %13 = vector.broadcast %11 : vector<1x128xf32> to vector<64x128xf32>
    %14 = arith.addf %12, %13 : vector<64x128xf32>
    %cst_9 = arith.constant 0.00999999977 : f32
    %15 = vector.broadcast %cst_9 : f32 to vector<64x128xf32>
    %16 = arith.mulf %15, %14 : vector<64x128xf32>
    %17 = arith.maximumf %14, %16 : vector<64x128xf32>
    %18 = arith.truncf %17 : vector<64x128xf32> to vector<64x128xbf16>
    %c256 = arith.constant 256 : index
    %c0_10 = arith.constant 0 : index
    %19 = vector.load %arg3[%c256, %c0_10] : memref<2048x256xbf16, #tpu.memory_space<vmem>>, vector<128x128xbf16>
    %c2 = arith.constant 2 : index
    %c0_11 = arith.constant 0 : index
    %20 = vector.load %arg4[%c2, %c0_11] : memref<13x256xf32, #tpu.memory_space<vmem>>, vector<1x128xf32>
    %cst_12 = arith.constant dense<0.000000e+00> : vector<64x128xf32>
    %21 = tpu.matmul %18, %19, %cst_12 {dimension_numbers = #tpu.dot_dimension_numbers<[1], [0], [0], [1], [0, 0, 1, 1], [], []>} : vector<64x128xbf16>, vector<128x128xbf16>, vector<64x128xf32> -> vector<64x128xf32>
    %22 = vector.broadcast %20 : vector<1x128xf32> to vector<64x128xf32>
    %23 = arith.addf %21, %22 : vector<64x128xf32>
    %cst_13 = arith.constant 0.00999999977 : f32
    %24 = vector.broadcast %cst_13 : f32 to vector<64x128xf32>
    %25 = arith.mulf %24, %23 : vector<64x128xf32>
    %26 = arith.maximumf %23, %25 : vector<64x128xf32>
    %27 = arith.truncf %26 : vector<64x128xf32> to vector<64x128xbf16>
    %c384 = arith.constant 384 : index
    %c0_14 = arith.constant 0 : index
    %28 = vector.load %arg3[%c384, %c0_14] : memref<2048x256xbf16, #tpu.memory_space<vmem>>, vector<128x128xbf16>
    %c3 = arith.constant 3 : index
    %c0_15 = arith.constant 0 : index
    %29 = vector.load %arg4[%c3, %c0_15] : memref<13x256xf32, #tpu.memory_space<vmem>>, vector<1x128xf32>
    %cst_16 = arith.constant dense<0.000000e+00> : vector<64x128xf32>
    %30 = tpu.matmul %27, %28, %cst_16 {dimension_numbers = #tpu.dot_dimension_numbers<[1], [0], [0], [1], [0, 0, 1, 1], [], []>} : vector<64x128xbf16>, vector<128x128xbf16>, vector<64x128xf32> -> vector<64x128xf32>
    %31 = vector.broadcast %29 : vector<1x128xf32> to vector<64x128xf32>
    %32 = arith.addf %30, %31 : vector<64x128xf32>
    %c512 = arith.constant 512 : index
    %c0_17 = arith.constant 0 : index
    %33 = vector.load %arg3[%c512, %c0_17] : memref<2048x256xbf16, #tpu.memory_space<vmem>>, vector<128x256xbf16>
    %c4 = arith.constant 4 : index
    %c0_18 = arith.constant 0 : index
    %34 = vector.load %arg4[%c4, %c0_18] : memref<13x256xf32, #tpu.memory_space<vmem>>, vector<1x256xf32>
    %35 = arith.truncf %32 : vector<64x128xf32> to vector<64x128xbf16>
    %cst_19 = arith.constant dense<0.000000e+00> : vector<64x256xf32>
    %36 = tpu.matmul %35, %33, %cst_19 {dimension_numbers = #tpu.dot_dimension_numbers<[1], [0], [0], [1], [0, 0, 1, 1], [], []>} : vector<64x128xbf16>, vector<128x256xbf16>, vector<64x256xf32> -> vector<64x256xf32>
    %37 = vector.broadcast %34 : vector<1x256xf32> to vector<64x256xf32>
    %38 = arith.addf %36, %37 : vector<64x256xf32>
    %cst_20 = arith.constant 0.00999999977 : f32
    %39 = vector.broadcast %cst_20 : f32 to vector<64x256xf32>
    %40 = arith.mulf %39, %38 : vector<64x256xf32>
    %41 = arith.maximumf %38, %40 : vector<64x256xf32>
    %42 = arith.truncf %41 : vector<64x256xf32> to vector<64x256xbf16>
    %c640 = arith.constant 640 : index
    %c0_21 = arith.constant 0 : index
    %43 = vector.load %arg3[%c640, %c0_21] : memref<2048x256xbf16, #tpu.memory_space<vmem>>, vector<256x256xbf16>
    %c5 = arith.constant 5 : index
    %c0_22 = arith.constant 0 : index
    %44 = vector.load %arg4[%c5, %c0_22] : memref<13x256xf32, #tpu.memory_space<vmem>>, vector<1x256xf32>
    %cst_23 = arith.constant dense<0.000000e+00> : vector<64x256xf32>
    %45 = tpu.matmul %42, %43, %cst_23 {dimension_numbers = #tpu.dot_dimension_numbers<[1], [0], [0], [1], [0, 0, 1, 1], [], []>} : vector<64x256xbf16>, vector<256x256xbf16>, vector<64x256xf32> -> vector<64x256xf32>
    %46 = vector.broadcast %44 : vector<1x256xf32> to vector<64x256xf32>
    %47 = arith.addf %45, %46 : vector<64x256xf32>
    %cst_24 = arith.constant 0.00999999977 : f32
    %48 = vector.broadcast %cst_24 : f32 to vector<64x256xf32>
    %49 = arith.mulf %48, %47 : vector<64x256xf32>
    %50 = arith.maximumf %47, %49 : vector<64x256xf32>
    %51 = arith.truncf %50 : vector<64x256xf32> to vector<64x256xbf16>
    %c896 = arith.constant 896 : index
    %c0_25 = arith.constant 0 : index
    %52 = vector.load %arg3[%c896, %c0_25] : memref<2048x256xbf16, #tpu.memory_space<vmem>>, vector<256x256xbf16>
    %c6 = arith.constant 6 : index
    %c0_26 = arith.constant 0 : index
    %53 = vector.load %arg4[%c6, %c0_26] : memref<13x256xf32, #tpu.memory_space<vmem>>, vector<1x256xf32>
    %cst_27 = arith.constant dense<0.000000e+00> : vector<64x256xf32>
    %54 = tpu.matmul %51, %52, %cst_27 {dimension_numbers = #tpu.dot_dimension_numbers<[1], [0], [0], [1], [0, 0, 1, 1], [], []>} : vector<64x256xbf16>, vector<256x256xbf16>, vector<64x256xf32> -> vector<64x256xf32>
    %55 = vector.broadcast %53 : vector<1x256xf32> to vector<64x256xf32>
    %56 = arith.addf %54, %55 : vector<64x256xf32>
    %cst_28 = arith.constant 0.00999999977 : f32
    %57 = vector.broadcast %cst_28 : f32 to vector<64x256xf32>
    %58 = arith.mulf %57, %56 : vector<64x256xf32>
    %59 = arith.maximumf %56, %58 : vector<64x256xf32>
    %60 = arith.truncf %59 : vector<64x256xf32> to vector<64x256xbf16>
    %c1152 = arith.constant 1152 : index
    %c0_29 = arith.constant 0 : index
    %61 = vector.load %arg3[%c1152, %c0_29] : memref<2048x256xbf16, #tpu.memory_space<vmem>>, vector<256x256xbf16>
    %c7 = arith.constant 7 : index
    %c0_30 = arith.constant 0 : index
    %62 = vector.load %arg4[%c7, %c0_30] : memref<13x256xf32, #tpu.memory_space<vmem>>, vector<1x256xf32>
    %cst_31 = arith.constant dense<0.000000e+00> : vector<64x256xf32>
    %63 = tpu.matmul %60, %61, %cst_31 {dimension_numbers = #tpu.dot_dimension_numbers<[1], [0], [0], [1], [0, 0, 1, 1], [], []>} : vector<64x256xbf16>, vector<256x256xbf16>, vector<64x256xf32> -> vector<64x256xf32>
    %64 = vector.broadcast %62 : vector<1x256xf32> to vector<64x256xf32>
    %65 = arith.addf %63, %64 : vector<64x256xf32>
    %66 = vector.extract_strided_slice %65 {offsets = [0, 0], sizes = [64, 128], strides = [1, 1]} : vector<64x256xf32> to vector<64x128xf32>
    %67 = vector.extract_strided_slice %65 {offsets = [0, 128], sizes = [64, 128], strides = [1, 1]} : vector<64x256xf32> to vector<64x128xf32>
    %cst_32 = arith.constant 5.000000e-01 : f32
    %68 = vector.broadcast %cst_32 : f32 to vector<64x128xf32>
    %69 = arith.mulf %68, %67 : vector<64x128xf32>
    %70 = math.exp %69 : vector<64x128xf32>
    %c0_33 = arith.constant 0 : index
    %c0_34 = arith.constant 0 : index
    %71 = vector.load %arg2[%c0_33, %c0_34] : memref<64x128xf32, #tpu.memory_space<vmem>>, vector<64x128xf32>
    %72 = arith.mulf %70, %71 : vector<64x128xf32>
    %73 = arith.addf %66, %72 : vector<64x128xf32>
    %c1408 = arith.constant 1408 : index
    %c0_35 = arith.constant 0 : index
    %74 = vector.load %arg3[%c1408, %c0_35] : memref<2048x256xbf16, #tpu.memory_space<vmem>>, vector<128x128xbf16>
    %c8 = arith.constant 8 : index
    %c0_36 = arith.constant 0 : index
    %75 = vector.load %arg4[%c8, %c0_36] : memref<13x256xf32, #tpu.memory_space<vmem>>, vector<1x128xf32>
    %76 = arith.truncf %73 : vector<64x128xf32> to vector<64x128xbf16>
    %cst_37 = arith.constant dense<0.000000e+00> : vector<64x128xf32>
    %77 = tpu.matmul %76, %74, %cst_37 {dimension_numbers = #tpu.dot_dimension_numbers<[1], [0], [0], [1], [0, 0, 1, 1], [], []>} : vector<64x128xbf16>, vector<128x128xbf16>, vector<64x128xf32> -> vector<64x128xf32>
    %78 = vector.broadcast %75 : vector<1x128xf32> to vector<64x128xf32>
    %79 = arith.addf %77, %78 : vector<64x128xf32>
    %cst_38 = arith.constant 0.00999999977 : f32
    %80 = vector.broadcast %cst_38 : f32 to vector<64x128xf32>
    %81 = arith.mulf %80, %79 : vector<64x128xf32>
    %82 = arith.maximumf %79, %81 : vector<64x128xf32>
    %83 = arith.truncf %82 : vector<64x128xf32> to vector<64x128xbf16>
    %c1536 = arith.constant 1536 : index
    %c0_39 = arith.constant 0 : index
    %84 = vector.load %arg3[%c1536, %c0_39] : memref<2048x256xbf16, #tpu.memory_space<vmem>>, vector<128x128xbf16>
    %c9 = arith.constant 9 : index
    %c0_40 = arith.constant 0 : index
    %85 = vector.load %arg4[%c9, %c0_40] : memref<13x256xf32, #tpu.memory_space<vmem>>, vector<1x128xf32>
    %cst_41 = arith.constant dense<0.000000e+00> : vector<64x128xf32>
    %86 = tpu.matmul %83, %84, %cst_41 {dimension_numbers = #tpu.dot_dimension_numbers<[1], [0], [0], [1], [0, 0, 1, 1], [], []>} : vector<64x128xbf16>, vector<128x128xbf16>, vector<64x128xf32> -> vector<64x128xf32>
    %87 = vector.broadcast %85 : vector<1x128xf32> to vector<64x128xf32>
    %88 = arith.addf %86, %87 : vector<64x128xf32>
    %cst_42 = arith.constant 0.00999999977 : f32
    %89 = vector.broadcast %cst_42 : f32 to vector<64x128xf32>
    %90 = arith.mulf %89, %88 : vector<64x128xf32>
    %91 = arith.maximumf %88, %90 : vector<64x128xf32>
    %92 = arith.truncf %91 : vector<64x128xf32> to vector<64x128xbf16>
    %c1664 = arith.constant 1664 : index
    %c0_43 = arith.constant 0 : index
    %93 = vector.load %arg3[%c1664, %c0_43] : memref<2048x256xbf16, #tpu.memory_space<vmem>>, vector<128x128xbf16>
    %c10 = arith.constant 10 : index
    %c0_44 = arith.constant 0 : index
    %94 = vector.load %arg4[%c10, %c0_44] : memref<13x256xf32, #tpu.memory_space<vmem>>, vector<1x128xf32>
    %cst_45 = arith.constant dense<0.000000e+00> : vector<64x128xf32>
    %95 = tpu.matmul %92, %93, %cst_45 {dimension_numbers = #tpu.dot_dimension_numbers<[1], [0], [0], [1], [0, 0, 1, 1], [], []>} : vector<64x128xbf16>, vector<128x128xbf16>, vector<64x128xf32> -> vector<64x128xf32>
    %96 = vector.broadcast %94 : vector<1x128xf32> to vector<64x128xf32>
    %97 = arith.addf %95, %96 : vector<64x128xf32>
    %cst_46 = arith.constant 0.00999999977 : f32
    %98 = vector.broadcast %cst_46 : f32 to vector<64x128xf32>
    %99 = arith.mulf %98, %97 : vector<64x128xf32>
    %100 = arith.maximumf %97, %99 : vector<64x128xf32>
    %101 = arith.truncf %100 : vector<64x128xf32> to vector<64x128xbf16>
    %c1792 = arith.constant 1792 : index
    %c0_47 = arith.constant 0 : index
    %102 = vector.load %arg3[%c1792, %c0_47] : memref<2048x256xbf16, #tpu.memory_space<vmem>>, vector<128x128xbf16>
    %c11 = arith.constant 11 : index
    %c0_48 = arith.constant 0 : index
    %103 = vector.load %arg4[%c11, %c0_48] : memref<13x256xf32, #tpu.memory_space<vmem>>, vector<1x128xf32>
    %cst_49 = arith.constant dense<0.000000e+00> : vector<64x128xf32>
    %104 = tpu.matmul %101, %102, %cst_49 {dimension_numbers = #tpu.dot_dimension_numbers<[1], [0], [0], [1], [0, 0, 1, 1], [], []>} : vector<64x128xbf16>, vector<128x128xbf16>, vector<64x128xf32> -> vector<64x128xf32>
    %105 = vector.broadcast %103 : vector<1x128xf32> to vector<64x128xf32>
    %106 = arith.addf %104, %105 : vector<64x128xf32>
    %cst_50 = arith.constant 0.00999999977 : f32
    %107 = vector.broadcast %cst_50 : f32 to vector<64x128xf32>
    %108 = arith.mulf %107, %106 : vector<64x128xf32>
    %109 = arith.maximumf %106, %108 : vector<64x128xf32>
    %110 = arith.truncf %109 : vector<64x128xf32> to vector<64x128xbf16>
    %c1920 = arith.constant 1920 : index
    %c0_51 = arith.constant 0 : index
    %111 = vector.load %arg3[%c1920, %c0_51] : memref<2048x256xbf16, #tpu.memory_space<vmem>>, vector<128x128xbf16>
    %c12 = arith.constant 12 : index
    %c0_52 = arith.constant 0 : index
    %112 = vector.load %arg4[%c12, %c0_52] : memref<13x256xf32, #tpu.memory_space<vmem>>, vector<1x128xf32>
    %cst_53 = arith.constant dense<0.000000e+00> : vector<64x128xf32>
    %113 = tpu.matmul %110, %111, %cst_53 {dimension_numbers = #tpu.dot_dimension_numbers<[1], [0], [0], [1], [0, 0, 1, 1], [], []>} : vector<64x128xbf16>, vector<128x128xbf16>, vector<64x128xf32> -> vector<64x128xf32>
    %114 = vector.broadcast %112 : vector<1x128xf32> to vector<64x128xf32>
    %115 = arith.addf %113, %114 : vector<64x128xf32>
    %c0_54 = arith.constant 0 : index
    %c0_55 = arith.constant 0 : index
    %116 = vector.load %arg5[%c0_54, %c0_55] : memref<64x128xf32, #tpu.memory_space<vmem>>, vector<64x128xf32>
    tpu.vector_store %arg5[%c0_54, %c0_55], %115 {strides = array<i32>} : memref<64x128xf32, #tpu.memory_space<vmem>>, vector<64x128xf32>,
    return
  }
  func.func @transform_0(%arg0: i32) -> (i32, i32) {
    %c0_i32 = arith.constant 0 : i32
    %c0_i32_0 = arith.constant 0 : i32
    return %arg0, %c0_i32 : i32, i32
  }
  func.func @transform_1(%arg0: i32) -> (i32, i32) {
    %c0_i32 = arith.constant 0 : i32
    %c0_i32_0 = arith.constant 0 : i32
    return %arg0, %c0_i32 : i32, i32
  }
  func.func @transform_2(%arg0: i32) -> (i32, i32) {
    %c0_i32 = arith.constant 0 : i32
    %c0_i32_0 = arith.constant 0 : i32
    %c0_i32_1 = arith.constant 0 : i32
    return %c0_i32, %c0_i32_0 : i32, i32
  }
  func.func @transform_3(%arg0: i32) -> (i32, i32) {
    %c0_i32 = arith.constant 0 : i32
    %c0_i32_0 = arith.constant 0 : i32
    %c0_i32_1 = arith.constant 0 : i32
    return %c0_i32, %c0_i32_0 : i32, i32
  }
  func.func @transform_4(%arg0: i32) -> (i32, i32) {
    %c0_i32 = arith.constant 0 : i32
    %c0_i32_0 = arith.constant 0 : i32
    return %arg0, %c0_i32 : i32, i32
  }
}

</mosaic_0001>

<bundles_post_ra>
// kernel: flatvae_forward.1
= control target key start
LH: loop header
LB: loop body
LE: loop exit
PB: predicated region body
PF: predicated region fallthrough
CT: control target
= control target key end

     0   :  { %9 = vsyncpa [#allocation3], 0  ;;  %s3718_s15 = smov 0   ;;  %s3906_s0 = inlined_call_operand.vmem [shape: bf16[128,128], index: 0, kind: input, shape index: {}]   ;;  %s3907_s1 = inlined_call_operand.vmem [shape: f32[128,128], index: 1, kind: input, shape index: {}]   ;;  %s3908_s2 = inlined_call_operand.hbm [shape: bf16[2048,256], index: 2, kind: input, shape index: {}]   ;;  %s3909_s3 = inlined_call_operand.vmem [shape: f32[13,256], index: 3, kind: input, shape index: {}]   ;;  %s3910_s4 = inlined_call_operand.vmem [shape: f32[128,128], index: 4, kind: output, shape index: {}]  }
   0x1 LB: > { %s151_s18 = sshll.u32 %s3908_s2, 4  ;;  %s2628_s19 = sadd.s32 4294967295, %s3688_s15   ;;  %s3688_s15 = sphi %s3718_s15, %s15_s15   ;;  %s152_s18 = int_to_ptr.hbm [resolvable:$true] %s151_s18 }
   0x2   : > { %p2630_p0 = scmp.ge.s32.totalorder %s3688_s15, 1  ;;  %p140_p1 = scmp.lt.s32.totalorder %s3688_s15, 3 }
   0x3   : > { %p3619_p2 = scmp.eq.s32.totalorder %s2628_s19, 0  ;;  %s3690_s20 = smov [#allocation2]  }
   0x4   : > { %p141_p3 = pnand %p2630_p0, %p140_p1  ;;  %s153_s21 = sshll.u32 %s3690_s20, 4  ;;  %s154_s21 = int_to_ptr.vmem [resolvable:$true] %s153_s21 }
   0x5   : > { %s3691_s22 = smov 128   ;;  %s3692_s23 = smov 8  }
   0x6   : > { %p3615_p4 = pneg %p141_p3  ;;  %190 = sbr.rel (%p141_p3) target bundleno = 1990 (0x7c6), region = 36 }
   0x8   : > { %p3616_p5 = pnand %p3619_p2, %p3615_p4 }
   0xa   : > { %3618 = dma.hbm_to_vmem [thread:$0]  (!%p3616_p5), %s152_s18, 32768, %s154_s21, [#allocation3], %s3691_s22, %s3691_s22, %s3692_s23  }
   0xb   : > { %3683 = dma.done.wait (%p3619_p2), [#allocation3], 32768  }
   0xc   : > { %3685 = vsyncadd (%p3619_p2), [#allocation3], 4294934528  ;;  %v2687_v0 = vld [vmem:[#allocation2 + $0x70] sm:$0xf]  ;;  %v3410_v1 = vld [vmem:[#allocation2 + $0x74] sm:$0xf0] }
   0xd   : > { %v2683_v2 = vld [vmem:[#allocation2 + $0x60] sm:$0xf]  ;;  %v2688_v3 = vor.u32 %v3410_v1, %v2687_v0  ;;  %v3409_v4 = vld [vmem:[#allocation2 + $0x64] sm:$0xf0]  ;;  %v2679_v6 = vld [vmem:[#allocation2 + $0x50] sm:$0xf] }
   0xe   : > { %v2684_v5 = vor.u32 %v3409_v4, %v2683_v2  ;;  %v3408_v7 = vld [vmem:[#allocation2 + $0x54] sm:$0xf0]  ;;  %v2675_v9 = vld [vmem:[#allocation2 + $0x40] sm:$0xf]  ;;  %v3407_v10 = vld [vmem:[#allocation2 + $0x44] sm:$0xf0] }
   0xf   : > { %337 = vmatpush.bf16.msra.mxu0 %v2688_v3  ;;  %3587 = vmatpush.bf16.msra.mxu3 %v2688_v3  ;;  %v2680_v8 = vor.u32 %v3408_v7, %v2679_v6  ;;  %v2676_v11 = vor.u32 %v3407_v10, %v2675_v9  ;;  %v2671_v12 = vld [vmem:[#allocation2 + $0x30] sm:$0xf]  ;;  %v3406_v13 = vld [vmem:[#allocation2 + $0x34] sm:$0xf0]  ;;  %s2635_s24 = sshll.u32 %s2628_s19, 3 }
  0x10   : > { %v2672_v14 = vor.u32 %v3406_v13, %v2671_v12  ;;  %v2667_v15 = vld [vmem:[#allocation2 + $0x20] sm:$0xf]  ;;  %v3405_v16 = vld [vmem:[#allocation2 + $0x24] sm:$0xf0]  ;;  %p223_p6 = scmp.lt.s32.totalorder %s2635_s24, 15 }
  0x11   : > { %v2719_v17 = vld [vmem:[#allocation2 + $0xf0] sm:$0xf]  ;;  %v3418_v18 = vld [vmem:[#allocation2 + $0xf4] sm:$0xf0]  ;;  %v2668_v19 = vor.u32 %v3405_v16, %v2667_v15  ;;  %v2715_v21 = vld [vmem:[#allocation2 + $0xe0] sm:$0xf] }
  0x12   : > { %v2720_v20 = vor.u32 %v3418_v18, %v2719_v17  ;;  %v3417_v22 = vld [vmem:[#allocation2 + $0xe4] sm:$0xf0]  ;;  %v2663_v23 = vld [vmem:[#allocation2 + $0x10] sm:$0xf]  ;;  %v3404_v24 = vld [vmem:[#allocation2 + $0x14] sm:$0xf0] }
  0x13   : > { %338 = vmatpush.bf16.msra.mxu0 %v2684_v5  ;;  %3588 = vmatpush.bf16.msra.mxu3 %v2684_v5  ;;  %s3912_s24 = smov (!%p223_p6, %s2635_s24), 15  ;;  %v2716_v25 = vor.u32 %v3417_v22, %v2715_v21  ;;  %v2711_v26 = vld [vmem:[#allocation2 + $0xd0] sm:$0xf]  ;;  %v3416_v27 = vld [vmem:[#allocation2 + $0xd4] sm:$0xf0]  ;;  %v2664_v28 = vor.u32 %v3404_v24, %v2663_v23 }
  0x14   : > { %451 = vmatpush.bf16.msra.mxu1 %v2720_v20  ;;  %v2659_v29 = vld [vmem:[#allocation2] sm:$0xf]  ;;  %v3403_v30 = vld [vmem:[#allocation2 + $0x4] sm:$0xf0]  ;;  %s2636_s25 = sshll.u32 %s3912_s24, 2  ;;  %v2712_v31 = vor.u32 %v3416_v27, %v2711_v26  ;;  %s2638_s20 = sshll.u32 %s3912_s24, 3 }
  0x15   : > { %v2707_v32 = vld [vmem:[#allocation2 + $0xc0] sm:$0xf]  ;;  %v3415_v33 = vld [vmem:[#allocation2 + $0xc4] sm:$0xf0]  ;;  %v2660_v34 = vor.u32 %v3403_v30, %v2659_v29  ;;  %s226_s28 = scalar_lea.vmem %s3906_s0, %s2636_s25  ;;  %v2703_v40 = vld [vmem:[#allocation2 + $0xb0] sm:$0xf]  ;;  %s3857_s23 = scalar_lea.vmem %s3907_s1, %s2638_s20 }
  0x16   : > { %v2708_v35 = vor.u32 %v3415_v33, %v2707_v32  ;;  %v3399_v36 = vld [vmem:[%s226_s28] sm:$0xff]  ;;  %v3401_v37 = vld [vmem:[%s226_s28 + $0x10] sm:$0xff]  ;;  %v3400_v38 = vld [vmem:[%s226_s28 + $0x8] sm:$0xff]  ;;  %s238_s11 = scalar_lea.vmem %s3910_s4, %s2638_s20 }
  0x17   : > { %339 = vmatpush.bf16.msra.mxu0 %v2680_v8  ;;  %3589 = vmatpush.bf16.msra.mxu3 %v2680_v8  ;;  %v3402_v39 = vld [vmem:[%s226_s28 + $0x18] sm:$0xff]  ;;  %v2699_v43 = vld [vmem:[#allocation2 + $0xa0] sm:$0xf]  ;;  %v3413_v44 = vld [vmem:[#allocation2 + $0xa4] sm:$0xf0] }
  0x18   : > { %452 = vmatpush.bf16.msra.mxu1 %v2716_v25  ;;  %v3414_v41 = vld [vmem:[#allocation2 + $0xb4] sm:$0xf0]  ;;  %v2700_v45 = vor.u32 %v3413_v44, %v2699_v43  ;;  %v2695_v46 = vld [vmem:[#allocation2 + $0x90] sm:$0xf]  ;;  %v2691_v49 = vld [vmem:[#allocation2 + $0x80] sm:$0xf] }
  0x19   : > { %v2704_v42 = vor.u32 %v3414_v41, %v2703_v40  ;;  %v3412_v47 = vld [vmem:[#allocation2 + $0x94] sm:$0xf0]  ;;  %v3411_v50 = vld [vmem:[#allocation2 + $0x84] sm:$0xf0]  ;;  %v264_v53 = vld [vmem:[%s3909_s3] ss:$0 sm:$0xff] }
  0x1a   : > { %v2696_v48 = vor.u32 %v3412_v47, %v2695_v46  ;;  %v2692_v51 = vor.u32 %v3411_v50, %v2691_v49  ;;  %v2751_v9 = vld [vmem:[#allocation2 + $0x170] sm:$0xf]  ;;  %v3426_v10 = vld [vmem:[#allocation2 + $0x174] sm:$0xf0]  ;;  %v2747_v12 = vld [vmem:[#allocation2 + $0x160] sm:$0xf] }
  0x1b   : > { %340 = vmatpush.bf16.msra.mxu0 %v2676_v11  ;;  %3590 = vmatpush.bf16.msra.mxu3 %v2676_v11  ;;  %v2752_v11 = vor.u32 %v3426_v10, %v2751_v9  ;;  %v3425_v13 = vld [vmem:[#allocation2 + $0x164] sm:$0xf0]  ;;  %v2743_v17 = vld [vmem:[#allocation2 + $0x150] sm:$0xf]  ;;  %v3424_v18 = vld [vmem:[#allocation2 + $0x154] sm:$0xf0] }
  0x1c   : > { %453 = vmatpush.bf16.msra.mxu1 %v2712_v31  ;;  %v2748_v16 = vor.u32 %v3425_v13, %v2747_v12  ;;  %v2744_v22 = vor.u32 %v3424_v18, %v2743_v17  ;;  %v2739_v23 = vld [vmem:[#allocation2 + $0x140] sm:$0xf]  ;;  %v3423_v24 = vld [vmem:[#allocation2 + $0x144] sm:$0xf0]  ;;  %v2727_v43 = vld [vmem:[#allocation2 + $0x110] sm:$0xf] }
  0x1d   : > { %565 = vmatpush.bf16.msra.mxu2 %v2752_v11  ;;  %v2740_v27 = vor.u32 %v3423_v24, %v2739_v23  ;;  %v2731_v40 = vld [vmem:[#allocation2 + $0x120] sm:$0xf]  ;;  %v3421_v41 = vld [vmem:[#allocation2 + $0x124] sm:$0xf0]  ;;  %v3420_v44 = vld [vmem:[#allocation2 + $0x114] sm:$0xf0] }
  0x1e   : > { %v2723_v46 = vld [vmem:[#allocation2 + $0x100] sm:$0xf]  ;;  %v3419_v47 = vld [vmem:[#allocation2 + $0x104] sm:$0xf0]  ;;  %v2775_v12 = vld [vmem:[#allocation2 + $0x1d0] sm:$0xf] }
  0x1f   : > { %341 = vmatpush.bf16.msra.mxu0 %v2672_v14  ;;  %3591 = vmatpush.bf16.msra.mxu3 %v2672_v14  ;;  %v402_v50 = vld [vmem:[%s3909_s3 + $0x1] ss:$0 sm:$0xff]  ;;  %v3433_v9 = vld [vmem:[#allocation2 + $0x1e4] sm:$0xf0]  ;;  %v3432_v13 = vld [vmem:[#allocation2 + $0x1d4] sm:$0xf0] }
  0x20   : > { %454 = vmatpush.bf16.msra.mxu1 %v2708_v35  ;;  %v2771_v18 = vld [vmem:[#allocation2 + $0x1c0] sm:$0xf] }
  0x21   : > { %566 = vmatpush.bf16.msra.mxu2 %v2748_v16 }
  0x23   : > { %342 = vmatpush.bf16.msra.mxu0 %v2668_v19  ;;  %3592 = vmatpush.bf16.msra.mxu3 %v2668_v19 }
  0x24   : > { %455 = vmatpush.bf16.msra.mxu1 %v2704_v42  ;;  %v2732_v42 = vor.u32 %v3421_v41, %v2731_v40  ;;  %v2759_v40 = vld [vmem:[#allocation2 + $0x190] sm:$0xf]  ;;  %v3428_v41 = vld [vmem:[#allocation2 + $0x194] sm:$0xf0] }
  0x25   : > { %567 = vmatpush.bf16.msra.mxu2 %v2744_v22 }
  0x27   : > { %343 = vmatpush.bf16.msra.mxu0 %v2664_v28  ;;  %3593 = vmatpush.bf16.msra.mxu3 %v2664_v28 }
  0x28   : > { %456 = vmatpush.bf16.msra.mxu1 %v2700_v45  ;;  %v2728_v45 = vor.u32 %v3420_v44, %v2727_v43  ;;  %v2755_v43 = vld [vmem:[#allocation2 + $0x180] sm:$0xf]  ;;  %v3427_v44 = vld [vmem:[#allocation2 + $0x184] sm:$0xf0] }
  0x29   : > { %568 = vmatpush.bf16.msra.mxu2 %v2740_v27 }
  0x2b   : > { %344 = vmatpush.bf16.msra.mxu0 %v2660_v34  ;;  %3594 = vmatpush.bf16.msra.mxu3 %v2660_v34 }
  0x2c   : > { %457 = vmatpush.bf16.msra.mxu1 %v2696_v48  ;;  %v2724_v48 = vor.u32 %v3419_v47, %v2723_v46  ;;  %v3748_v47 = vld [vmem:[%s3909_s3 + $0x2] ss:$0 sm:$0xff] }
  0x2e   : > { %345 = vmatmul.bf16.vlgmr.msra.gmra.mxu0 %v3399_v36  ;;  %355 = vmatmul.bf16.vlgmr.msra.gmra.mxu3 %v3401_v37  ;;  %v2735_v37 = vld [vmem:[#allocation2 + $0x130] sm:$0xf] }
  0x30   : > { %458 = vmatpush.bf16.msra.mxu1 %v2692_v51 }
  0x3e   : > { %350 = vmatmul.bf16.gmra.mxu0 %v3400_v38  ;;  %360 = vmatmul.bf16.gmra.mxu3 %v3402_v39  ;;  %v3422_v38 = vld [vmem:[#allocation2 + $0x134] sm:$0xf0] }
  0x3f   : > { %v2736_v39 = vor.u32 %v3422_v38, %v2735_v37  ;;  %v2763_v37 = vld [vmem:[#allocation2 + $0x1a0] sm:$0xf]  ;;  %v3429_v38 = vld [vmem:[#allocation2 + $0x1a4] sm:$0xf0] }
  0x41   : > { %569 = vmatpush.bf16.msra.mxu2 %v2736_v39  ;;  %v2764_v39 = vor.u32 %v3429_v38, %v2763_v37  ;;  %v2812_v38 = vld [vmem:[#allocation2 + $0x230] sm:$0xf] }
  0x45   : > { %570 = vmatpush.bf16.msra.mxu2 %v2732_v42  ;;  %v2760_v42 = vor.u32 %v3428_v41, %v2759_v40  ;;  %v3439_v40 = vld [vmem:[#allocation2 + $0x224] sm:$0xf]  ;;  %v2806_v41 = vld [vmem:[#allocation2 + $0x228] sm:$0xf0] }
  0x49   : > { %571 = vmatpush.bf16.msra.mxu2 %v2728_v45  ;;  %v2756_v45 = vor.u32 %v3427_v44, %v2755_v43  ;;  %v2809_v43 = vor.u32 %v3439_v40, %v2806_v41  ;;  %v3479_v40 = vld [vmem:[#allocation2 + $0x364] sm:$0xf]  ;;  %v2967_v41 = vld [vmem:[#allocation2 + $0x368] sm:$0xf0] }
  0x4d   : > { %572 = vmatpush.bf16.msra.mxu2 %v2724_v48 }
  0xab   : > { %v346_v52 = vpop.f32.mrf.mxu0 }
  0xac   : > { %v347_v54 = vadd.f32 %v346_v52, %v264_v53 }
  0xae   : > { %v366_v56 = vmul.f32 0.01, %v347_v54 }
  0xb0   : > { %v374_v59 = vmax.f32 %v347_v54, %v366_v56 }
  0xb1   : > { %v356_v63 = vpop.f32.mrf.mxu3 }
  0xb2   : > { %v357_v14 = vadd.f32 %v356_v63, %v264_v53 }
  0xb3   : > { %v348_v55 = vpop.f32.mrf.mxu0 }
  0xb4   : > { %v349_v57 = vadd.f32 %v348_v55, %v264_v53  ;;  %v370_v20 = vmul.f32 0.01, %v357_v14 }
  0xb6   : > { %v367_v58 = vmul.f32 0.01, %v349_v57  ;;  %v378_v25 = vmax.f32 %v357_v14, %v370_v20 }
  0xb8   : > { %v375_v60 = vmax.f32 %v349_v57, %v367_v58 }
  0xb9   : > { %v358_v5 = vpop.f32.mrf.mxu3 }
  0xba   : > { %v382_v61 = vpack.c.bf16 %v375_v60, %v374_v59  ;;  %v359_v15 = vadd.f32 %v358_v5, %v264_v53  ;;  %v2783_v5 = vld [vmem:[#allocation2 + $0x1f0] sm:$0xf] }
  0xbb   : > { %v351_v62 = vpop.f32.mrf.mxu0 }
  0xbc   : > { %459 = vmatmul.bf16.vlgmr.msra.gmra.mxu1 %v382_v61  ;;  %v352_v0 = vadd.f32 %v351_v62, %v264_v53  ;;  %v371_v21 = vmul.f32 0.01, %v359_v15 }
  0xbe   : > { %v368_v2 = vmul.f32 0.01, %v352_v0  ;;  %v379_v26 = vmax.f32 %v359_v15, %v371_v21  ;;  %v2776_v15 = vor.u32 %v3432_v13, %v2775_v12  ;;  %v2830_v12 = vld [vmem:[#allocation2 + $0x258] sm:$0xf0] }
  0xc0   : > { %v376_v6 = vmax.f32 %v352_v0, %v368_v2  ;;  %v384_v28 = vpack.c.bf16 %v379_v26, %v378_v25 }
  0xc1   : > { %v361_v19 = vpop.f32.mrf.mxu3 }
  0xc2   : > { %v362_v30 = vadd.f32 %v361_v19, %v264_v53  ;;  %v3431_v19 = vld [vmem:[#allocation2 + $0x1c4] sm:$0xf0] }
  0xc3   : > { %v353_v1 = vpop.f32.mrf.mxu0  ;;  %v2772_v21 = vor.u32 %v3431_v19, %v2771_v18  ;;  %v2828_v19 = vld [vmem:[#allocation2 + $0x250] sm:$0xf] }
  0xc4   : > { %v354_v3 = vadd.f32 %v353_v1, %v264_v53  ;;  %v372_v32 = vmul.f32 0.01, %v362_v30 }
  0xc6   : > { %v369_v4 = vmul.f32 0.01, %v354_v3  ;;  %v380_v34 = vmax.f32 %v362_v30, %v372_v32 }
  0xc8   : > { %v377_v7 = vmax.f32 %v354_v3, %v369_v4 }
  0xc9   : > { %v363_v29 = vpop.f32.mrf.mxu3 }
  0xca   : > { %v383_v8 = vpack.c.bf16 %v377_v7, %v376_v6  ;;  %v364_v31 = vadd.f32 %v363_v29, %v264_v53  ;;  %v3434_v6 = vld [vmem:[#allocation2 + $0x1f4] sm:$0xf0]  ;;  %v2779_v7 = vld [vmem:[#allocation2 + $0x1e0] sm:$0xf] }
  0xcb   : > { %v2780_v10 = vor.u32 %v3433_v9, %v2779_v7  ;;  %v2844_v9 = vld [vmem:[#allocation2 + $0x270] sm:$0xf] }
  0xcc   : > { %464 = vmatmul.bf16.gmra.mxu1 %v383_v8  ;;  %v373_v33 = vmul.f32 0.01, %v364_v31  ;;  %v2784_v8 = vor.u32 %v3434_v6, %v2783_v5  ;;  %v2838_v6 = vld [vmem:[#allocation2 + $0x268] sm:$0xf0] }
  0xce   : > { %v381_v35 = vmax.f32 %v364_v31, %v373_v33  ;;  %679 = vmatpush.bf16.msrb.mxu3 %v2784_v8  ;;  %v3445_v8 = vld [vmem:[#allocation2 + $0x254] sm:$0xf] }
  0xcf   : > { %v2833_v18 = vor.u32 %v3445_v8, %v2830_v12 }
  0xd0   : > { %v385_v36 = vpack.c.bf16 %v381_v35, %v380_v34  ;;  %v2767_v34 = vld [vmem:[#allocation2 + $0x1b0] sm:$0xf]  ;;  %v3430_v35 = vld [vmem:[#allocation2 + $0x1b4] sm:$0xf0] }
  0xd2   : > { %680 = vmatpush.bf16.msrb.mxu3 %v2780_v10  ;;  %v3450_v10 = vld [vmem:[#allocation2 + $0x274] sm:$0xf0] }
  0xd3   : > { %v2845_v13 = vor.u32 %v3450_v10, %v2844_v9 }
  0xd5   : > { %815 = vmatpush.bf16.msrb.mxu0 %v2845_v13 }
  0xd6   : > { %681 = vmatpush.bf16.msrb.mxu3 %v2776_v15  ;;  %v3448_v15 = vld [vmem:[#allocation2 + $0x264] sm:$0xf0] }
  0xda   : > { %682 = vmatpush.bf16.msrb.mxu3 %v2772_v21 }
  0xdc   : > { %469 = vmatmul.bf16.gmra.mxu1 %v384_v28 }
  0xec   : > { %474 = vmatmul.bf16.gmra.mxu1 %v385_v36  ;;  %v2768_v36 = vor.u32 %v3430_v35, %v2767_v34 }
  0xee   : > { %683 = vmatpush.bf16.msrb.mxu3 %v2768_v36 }
  0xf2   : > { %684 = vmatpush.bf16.msrb.mxu3 %v2764_v39  ;;  %v3442_v39 = vld [vmem:[#allocation2 + $0x234] sm:$0xf0] }
  0xf6   : > { %685 = vmatpush.bf16.msrb.mxu3 %v2760_v42  ;;  %v2813_v42 = vor.u32 %v3442_v39, %v2812_v38  ;;  %v3478_v38 = vld [vmem:[#allocation2 + $0x354] sm:$0xf0] }
  0xfa   : > { %686 = vmatpush.bf16.msrb.mxu3 %v2756_v45  ;;  %v3437_v45 = vld [vmem:[#allocation2 + $0x214] sm:$0xf] }
 0x139   : > { %v460_v49 = vpop.f32.mrf.mxu1 }
 0x13a   : > { %v461_v51 = vadd.f32 %v460_v49, %v402_v50 }
 0x13c   : > { %v480_v53 = vmul.f32 0.01, %v461_v51 }
 0x13e   : > { %v488_v56 = vmax.f32 %v461_v51, %v480_v53 }
 0x141   : > { %v462_v52 = vpop.f32.mrf.mxu1 }
 0x142   : > { %v463_v54 = vadd.f32 %v462_v52, %v402_v50 }
 0x144   : > { %v481_v55 = vmul.f32 0.01, %v463_v54 }
 0x146   : > { %v489_v57 = vmax.f32 %v463_v54, %v481_v55 }
 0x148   : > { %v496_v58 = vpack.c.bf16 %v489_v57, %v488_v56 }
 0x149   : > { %v465_v59 = vpop.f32.mrf.mxu1 }
 0x14a   : > { %573 = vmatmul.bf16.vlgmr.msra.gmra.mxu2 %v496_v58  ;;  %v466_v60 = vadd.f32 %v465_v59, %v402_v50 }
 0x14c   : > { %v482_v62 = vmul.f32 0.01, %v466_v60 }
 0x14e   : > { %v490_v1 = vmax.f32 %v466_v60, %v482_v62 }
 0x151   : > { %v467_v61 = vpop.f32.mrf.mxu1 }
 0x152   : > { %v468_v63 = vadd.f32 %v467_v61, %v402_v50 }
 0x154   : > { %v483_v0 = vmul.f32 0.01, %v468_v63 }
 0x156   : > { %v491_v2 = vmax.f32 %v468_v63, %v483_v0 }
 0x158   : > { %v497_v3 = vpack.c.bf16 %v491_v2, %v490_v1  ;;  %v3449_v2 = vld [vmem:[#allocation2 + $0x274] sm:$0xf] }
 0x159   : > { %v470_v4 = vpop.f32.mrf.mxu1 }
 0x15a   : > { %578 = vmatmul.bf16.gmra.mxu2 %v497_v3  ;;  %v471_v11 = vadd.f32 %v470_v4, %v402_v50  ;;  %v2846_v3 = vld [vmem:[#allocation2 + $0x278] sm:$0xf0]  ;;  %v3447_v4 = vld [vmem:[#allocation2 + $0x264] sm:$0xf] }
 0x15b   : > { %v2849_v5 = vor.u32 %v3449_v2, %v2846_v3  ;;  %v2841_v7 = vor.u32 %v3447_v4, %v2838_v6  ;;  %v3761_v4 = vld [vmem:[%s3909_s3 + $0x3] ss:$0 sm:$0xff] }
 0x15c   : > { %v484_v16 = vmul.f32 0.01, %v471_v11 }
 0x15d   : > { %844 = vmatpush.bf16.msrb.mxu1 %v2849_v5 }
 0x15e   : > { %v492_v22 = vmax.f32 %v471_v11, %v484_v16 }
 0x161   : > { %v472_v14 = vpop.f32.mrf.mxu1  ;;  %845 = vmatpush.bf16.msrb.mxu1 %v2841_v7 }
 0x162   : > { %v473_v17 = vadd.f32 %v472_v14, %v402_v50  ;;  %v2836_v14 = vld [vmem:[#allocation2 + $0x260] sm:$0xf] }
 0x163   : > { %v2837_v16 = vor.u32 %v3448_v15, %v2836_v14  ;;  %v2909_v14 = vld [vmem:[#allocation2 + $0x2f0] sm:$0xf]  ;;  %v3466_v15 = vld [vmem:[#allocation2 + $0x2f4] sm:$0xf0] }
 0x164   : > { %v485_v20 = vmul.f32 0.01, %v473_v17 }
 0x165   : > { %816 = vmatpush.bf16.msrb.mxu0 %v2837_v16  ;;  %846 = vmatpush.bf16.msrb.mxu1 %v2833_v18  ;;  %v2973_v16 = vld [vmem:[#allocation2 + $0x370] sm:$0xf]  ;;  %v3482_v18 = vld [vmem:[#allocation2 + $0x374] sm:$0xf0] }
 0x166   : > { %v493_v23 = vmax.f32 %v473_v17, %v485_v20  ;;  %v3446_v20 = vld [vmem:[#allocation2 + $0x254] sm:$0xf0] }
 0x168   : > { %v498_v24 = vpack.c.bf16 %v493_v23, %v492_v22  ;;  %v3443_v23 = vld [vmem:[#allocation2 + $0x244] sm:$0xf] }
 0x169   : > { %v475_v25 = vpop.f32.mrf.mxu1 }
 0x16a   : > { %583 = vmatmul.bf16.gmra.mxu2 %v498_v24  ;;  %v476_v26 = vadd.f32 %v475_v25, %v402_v50  ;;  %v2822_v24 = vld [vmem:[#allocation2 + $0x248] sm:$0xf0] }
 0x16c   : > { %v486_v28 = vmul.f32 0.01, %v476_v26 }
 0x16e   : > { %v494_v31 = vmax.f32 %v476_v26, %v486_v28  ;;  %v2829_v26 = vor.u32 %v3446_v20, %v2828_v19  ;;  %v2820_v28 = vld [vmem:[#allocation2 + $0x240] sm:$0xf]  ;;  %v3464_v20 = vld [vmem:[#allocation2 + $0x2e4] sm:$0xf0] }
 0x16f   : > { %v2901_v19 = vld [vmem:[#allocation2 + $0x2e0] sm:$0xf] }
 0x170   : > { %817 = vmatpush.bf16.msrb.mxu0 %v2829_v26  ;;  %v2902_v26 = vor.u32 %v3464_v20, %v2901_v19 }
 0x171   : > { %v477_v27 = vpop.f32.mrf.mxu1 }
 0x172   : > { %v478_v29 = vadd.f32 %v477_v27, %v402_v50  ;;  %v2825_v27 = vor.u32 %v3443_v23, %v2822_v24  ;;  %v2911_v23 = vld [vmem:[#allocation2 + $0x2f8] sm:$0xf0]  ;;  %v2965_v24 = vld [vmem:[#allocation2 + $0x360] sm:$0xf] }
 0x174   : > { %v487_v30 = vmul.f32 0.01, %v478_v29  ;;  %847 = vmatpush.bf16.msrb.mxu1 %v2825_v27 }
 0x176   : > { %v495_v32 = vmax.f32 %v478_v29, %v487_v30  ;;  %v3444_v29 = vld [vmem:[#allocation2 + $0x244] sm:$0xf0] }
 0x177   : > { %v2821_v35 = vor.u32 %v3444_v29, %v2820_v28  ;;  %v3480_v28 = vld [vmem:[#allocation2 + $0x364] sm:$0xf0]  ;;  %v3481_v29 = vld [vmem:[#allocation2 + $0x374] sm:$0xf] }
 0x178   : > { %v499_v33 = vpack.c.bf16 %v495_v32, %v494_v31  ;;  %v3441_v32 = vld [vmem:[#allocation2 + $0x234] sm:$0xf] }
 0x179   : > { %818 = vmatpush.bf16.msrb.mxu0 %v2821_v35  ;;  %v3463_v35 = vld [vmem:[#allocation2 + $0x2e4] sm:$0xf] }
 0x17a   : > { %588 = vmatmul.bf16.gmra.mxu2 %v499_v33  ;;  %v2814_v33 = vld [vmem:[#allocation2 + $0x238] sm:$0xf0] }
 0x17b   : > { %v2817_v37 = vor.u32 %v3441_v32, %v2814_v33  ;;  %v2893_v33 = vld [vmem:[#allocation2 + $0x2d0] sm:$0xf] }
 0x17d   : > { %848 = vmatpush.bf16.msrb.mxu1 %v2817_v37  ;;  %819 = vmatpush.bf16.msrb.mxu0 %v2813_v42  ;;  %v2957_v37 = vld [vmem:[#allocation2 + $0x350] sm:$0xf] }
 0x181   : > { %849 = vmatpush.bf16.msrb.mxu1 %v2809_v43  ;;  %v2970_v43 = vor.u32 %v3479_v40, %v2967_v41  ;;  %v2863_v40 = vld [vmem:[#allocation2 + $0x298] sm:$0xf0] }
 0x1cd   : > { %v574_v46 = vpop.f32.mrf.mxu2 }
 0x1ce   : > { %v575_v48 = vadd.f32 %v574_v46, %v3748_v47  ;;  %v2798_v46 = vld [vmem:[#allocation2 + $0x218] sm:$0xf0] }
 0x1d0   : > { %v594_v50 = vmul.f32 0.01, %v575_v48 }
 0x1d2   : > { %v602_v53 = vmax.f32 %v575_v48, %v594_v50 }
 0x1d5   : > { %v576_v49 = vpop.f32.mrf.mxu2 }
 0x1d6   : > { %v577_v51 = vadd.f32 %v576_v49, %v3748_v47  ;;  %v2801_v49 = vor.u32 %v3437_v45, %v2798_v46  ;;  %v2895_v45 = vld [vmem:[#allocation2 + $0x2d8] sm:$0xf0]  ;;  %v2958_v46 = vor.u32 %v3478_v38, %v2957_v37  ;;  %v3470_v37 = vld [vmem:[#allocation2 + $0x314] sm:$0xf0] }
 0x1d8   : > { %v595_v52 = vmul.f32 0.01, %v577_v51  ;;  %850 = vmatpush.bf16.msrb.mxu1 %v2801_v49  ;;  %v3460_v49 = vld [vmem:[#allocation2 + $0x2c4] sm:$0xf0] }
 0x1da   : > { %v603_v54 = vmax.f32 %v577_v51, %v595_v52 }
 0x1dc   : > { %v610_v55 = vpack.c.bf16 %v603_v54, %v602_v53 }
 0x1dd   : > { %v579_v56 = vpop.f32.mrf.mxu2 }
 0x1de   : > { %687 = vmatmul.bf16.vlgmr.msrb.gmra.mxu3 %v610_v55  ;;  %v580_v57 = vadd.f32 %v579_v56, %v3748_v47  ;;  %v2804_v56 = vld [vmem:[#allocation2 + $0x220] sm:$0xf] }
 0x1e0   : > { %v596_v59 = vmul.f32 0.01, %v580_v57 }
 0x1e2   : > { %v604_v62 = vmax.f32 %v580_v57, %v596_v59  ;;  %v3440_v57 = vld [vmem:[#allocation2 + $0x224] sm:$0xf0]  ;;  %v2796_v59 = vld [vmem:[#allocation2 + $0x210] sm:$0xf] }
 0x1e5   : > { %v581_v58 = vpop.f32.mrf.mxu2 }
 0x1e6   : > { %v582_v60 = vadd.f32 %v581_v58, %v3748_v47  ;;  %v2805_v58 = vor.u32 %v3440_v57, %v2804_v56  ;;  %v3459_v56 = vld [vmem:[#allocation2 + $0x2c4] sm:$0xf]  ;;  %v2887_v57 = vld [vmem:[#allocation2 + $0x2c8] sm:$0xf0] }
 0x1e8   : > { %v597_v61 = vmul.f32 0.01, %v582_v60  ;;  %820 = vmatpush.bf16.msrb.mxu0 %v2805_v58 }
 0x1ea   : > { %v605_v63 = vmax.f32 %v582_v60, %v597_v61  ;;  %v3438_v60 = vld [vmem:[#allocation2 + $0x214] sm:$0xf0]  ;;  %v3435_v61 = vld [vmem:[#allocation2 + $0x204] sm:$0xf] }
 0x1ec   : > { %v611_v0 = vpack.c.bf16 %v605_v63, %v604_v62  ;;  %v2797_v62 = vor.u32 %v3438_v60, %v2796_v59  ;;  %v2790_v63 = vld [vmem:[#allocation2 + $0x208] sm:$0xf0]  ;;  %v3475_v60 = vld [vmem:[#allocation2 + $0x344] sm:$0xf] }
 0x1ed   : > { %v584_v1 = vpop.f32.mrf.mxu2 }
 0x1ee   : > { %692 = vmatmul.bf16.gmra.mxu3 %v611_v0  ;;  %v585_v11 = vadd.f32 %v584_v1, %v3748_v47  ;;  %v2793_v0 = vor.u32 %v3435_v61, %v2790_v63  ;;  %821 = vmatpush.bf16.msrb.mxu0 %v2797_v62  ;;  %v2788_v1 = vld [vmem:[#allocation2 + $0x200] sm:$0xf]  ;;  %v2951_v61 = vld [vmem:[#allocation2 + $0x348] sm:$0xf0] }
 0x1f0   : > { %v598_v21 = vmul.f32 0.01, %v585_v11  ;;  %851 = vmatpush.bf16.msrb.mxu1 %v2793_v0  ;;  %v2877_v0 = vld [vmem:[#allocation2 + $0x2b0] sm:$0xf] }
 0x1f2   : > { %v606_v30 = vmax.f32 %v585_v11, %v598_v21  ;;  %v2974_v21 = vor.u32 %v3482_v18, %v2973_v16  ;;  %v3472_v18 = vld [vmem:[#allocation2 + $0x324] sm:$0xf0] }
 0x1f4   : > { %1141 = vmatpush.bf16.msra.mxu3 %v2974_v21 }
 0x1f5   : > { %v586_v17 = vpop.f32.mrf.mxu2 }
 0x1f6   : > { %v587_v22 = vadd.f32 %v586_v17, %v3748_v47  ;;  %v2910_v17 = vor.u32 %v3466_v15, %v2909_v14  ;;  %v3456_v14 = vld [vmem:[#allocation2 + $0x2a4] sm:$0xf0] }
 0x1f8   : > { %v599_v25 = vmul.f32 0.01, %v587_v22  ;;  %1112 = vmatpush.bf16.msrb.mxu2 %v2910_v17  ;;  %v2933_v17 = vld [vmem:[#allocation2 + $0x320] sm:$0xf] }
 0x1fa   : > { %v607_v31 = vmax.f32 %v587_v22, %v599_v25  ;;  %v3465_v22 = vld [vmem:[#allocation2 + $0x2f4] sm:$0xf] }
 0x1fb   : > { %v2914_v27 = vor.u32 %v3465_v22, %v2911_v23  ;;  %v2934_v22 = vor.u32 %v3472_v18, %v2933_v17 }
 0x1fc   : > { %v612_v34 = vpack.c.bf16 %v607_v31, %v606_v30  ;;  %v2975_v30 = vld [vmem:[#allocation2 + $0x378] sm:$0xf0]  ;;  %v2966_v31 = vor.u32 %v3480_v28, %v2965_v24  ;;  %1113 = vmatpush.bf16.msrb.mxu2 %v2902_v26  ;;  %v2871_v28 = vld [vmem:[#allocation2 + $0x2a8] sm:$0xf0] }
 0x1fd   : > { %v589_v36 = vpop.f32.mrf.mxu2  ;;  %v2978_v32 = vor.u32 %v3481_v29, %v2975_v30  ;;  %v3471_v29 = vld [vmem:[#allocation2 + $0x324] sm:$0xf] }
 0x1fe   : > { %697 = vmatmul.bf16.gmra.mxu3 %v612_v34  ;;  %v590_v44 = vadd.f32 %v589_v36, %v3748_v47  ;;  %v3462_v34 = vld [vmem:[#allocation2 + $0x2d4] sm:$0xf0]  ;;  %v2903_v36 = vld [vmem:[#allocation2 + $0x2e8] sm:$0xf0] }
 0x1ff   : > { %1199 = vmatpush.bf16.msra.mxu1 %v2978_v32  ;;  %v2906_v39 = vor.u32 %v3463_v35, %v2903_v36  ;;  %v2894_v42 = vor.u32 %v3462_v34, %v2893_v33  ;;  %1142 = vmatpush.bf16.msra.mxu3 %v2966_v31  ;;  %v2935_v31 = vld [vmem:[#allocation2 + $0x328] sm:$0xf0]  ;;  %v2861_v32 = vld [vmem:[#allocation2 + $0x290] sm:$0xf]  ;;  %v3454_v33 = vld [vmem:[#allocation2 + $0x294] sm:$0xf0] }
 0x200   : > { %v600_v50 = vmul.f32 0.01, %v590_v44  ;;  %v2925_v34 = vld [vmem:[#allocation2 + $0x310] sm:$0xf]  ;;  %v2938_v35 = vor.u32 %v3471_v29, %v2935_v31  ;;  %v2862_v36 = vor.u32 %v3454_v33, %v2861_v32 }
 0x201   : > { %1114 = vmatpush.bf16.msrb.mxu2 %v2894_v42  ;;  %v2926_v38 = vor.u32 %v3470_v37, %v2925_v34  ;;  %v2927_v42 = vld [vmem:[#allocation2 + $0x318] sm:$0xf0]  ;;  %v3102_v37 = vld [vmem:[#allocation2 + $0x470] sm:$0xf] }
 0x202   : > { %v608_v53 = vmax.f32 %v590_v44, %v600_v50  ;;  %v3461_v44 = vld [vmem:[#allocation2 + $0x2d4] sm:$0xf] }
 0x203   : > { %v3477_v50 = vld [vmem:[#allocation2 + $0x354] sm:$0xf]  ;;  %1200 = vmatpush.bf16.msra.mxu1 %v2970_v43  ;;  %1143 = vmatpush.bf16.msra.mxu3 %v2958_v46  ;;  %v2917_v46 = vld [vmem:[#allocation2 + $0x300] sm:$0xf] }
 0x205   : > { %v591_v48 = vpop.f32.mrf.mxu2 }
 0x206   : > { %v592_v51 = vadd.f32 %v591_v48, %v3748_v47  ;;  %v3436_v47 = vld [vmem:[#allocation2 + $0x204] sm:$0xf0]  ;;  %v2885_v48 = vld [vmem:[#allocation2 + $0x2c0] sm:$0xf] }
 0x207   : > { %v2789_v2 = vor.u32 %v3436_v47, %v2788_v1  ;;  %v2886_v59 = vor.u32 %v3460_v49, %v2885_v48  ;;  %v3458_v1 = vld [vmem:[#allocation2 + $0x2b4] sm:$0xf0]  ;;  %v3468_v49 = vld [vmem:[#allocation2 + $0x304] sm:$0xf0] }
 0x208   : > { %v601_v52 = vmul.f32 0.01, %v592_v51 }
 0x209   : > { %822 = vmatpush.bf16.msrb.mxu0 %v2789_v2  ;;  %v2890_v2 = vor.u32 %v3459_v56, %v2887_v57  ;;  %1115 = vmatpush.bf16.msrb.mxu2 %v2886_v59  ;;  %v2785_v57 = vld [vmem:[%s3909_s3 + $0x4] ss:$8 sm:$0x3] }
 0x20a   : > { %v609_v54 = vmax.f32 %v592_v51, %v601_v52  ;;  %v2898_v51 = vor.u32 %v3461_v44, %v2895_v45  ;;  %v2949_v52 = vld [vmem:[#allocation2 + $0x340] sm:$0xf]  ;;  %v3452_v45 = vld [vmem:[#allocation2 + $0x284] sm:$0xf0] }
 0x20b   : > { %v2853_v44 = vld [vmem:[#allocation2 + $0x280] sm:$0xf] }
 0x20c   : > { %v613_v55 = vpack.c.bf16 %v609_v54, %v608_v53  ;;  %v2959_v53 = vld [vmem:[#allocation2 + $0x358] sm:$0xf0]  ;;  %v3476_v54 = vld [vmem:[#allocation2 + $0x344] sm:$0xf0]  ;;  %v2854_v48 = vor.u32 %v3452_v45, %v2853_v44 }
 0x20d   : > { %1170 = vmatpush.bf16.msra.mxu0 %v2914_v27  ;;  %v2950_v47 = vor.u32 %v3476_v54, %v2949_v52  ;;  %v3455_v27 = vld [vmem:[#allocation2 + $0x2a4] sm:$0xf]  ;;  %v2918_v52 = vor.u32 %v3468_v49, %v2917_v46  ;;  %v3040_v46 = vld [vmem:[#allocation2 + $0x3f8] sm:$0xf0]  ;;  %v3512_v49 = vld [vmem:[#allocation2 + $0x464] sm:$0xf0] }
 0x20e   : > { %702 = vmatmul.bf16.gmra.mxu3 %v613_v55  ;;  %v2962_v55 = vor.u32 %v3477_v50, %v2959_v53  ;;  %v2874_v30 = vor.u32 %v3455_v27, %v2871_v28  ;;  %v3451_v50 = vld [vmem:[#allocation2 + $0x284] sm:$0xf] }
 0x20f   : > { %1144 = vmatpush.bf16.msra.mxu3 %v2950_v47  ;;  %v3467_v54 = vld [vmem:[#allocation2 + $0x304] sm:$0xf] }
 0x210   : > { %1201 = vmatpush.bf16.msra.mxu1 %v2962_v55  ;;  %v2919_v55 = vld [vmem:[#allocation2 + $0x308] sm:$0xf0] }
 0x211   : > { %1171 = vmatpush.bf16.msra.mxu0 %v2906_v39  ;;  %v3453_v39 = vld [vmem:[#allocation2 + $0x294] sm:$0xf]  ;;  %v2922_v56 = vor.u32 %v3467_v54, %v2919_v55  ;;  %v3022_v54 = vld [vmem:[#allocation2 + $0x3d0] sm:$0xf] }
 0x212   : > { %v2866_v41 = vor.u32 %v3453_v39, %v2863_v40  ;;  %v3514_v40 = vld [vmem:[#allocation2 + $0x474] sm:$0xf0] }
 0x215   : > { %1172 = vmatpush.bf16.msra.mxu0 %v2898_v51  ;;  %v2855_v51 = vld [vmem:[#allocation2 + $0x288] sm:$0xf0] }
 0x216   : > { %v2858_v53 = vor.u32 %v3451_v50, %v2855_v51 }
 0x219   : > { %1173 = vmatpush.bf16.msra.mxu0 %v2890_v2 }
 0x261   : > { %v688_v3 = vpop.f32.mrf.mxu3 }
 0x262   : > { %v689_v6 = vadd.f32 %v688_v3, %v3761_v4  ;;  %v2941_v3 = vld [vmem:[#allocation2 + $0x330] sm:$0xf] }
 0x269   : > { %v690_v5 = vpop.f32.mrf.mxu3 }
 0x26a   : > { %v691_v7 = vadd.f32 %v690_v5, %v3761_v4 }
 0x26c   : > { %v726_v8 = vpack.c.bf16 %v691_v7, %v689_v6  ;;  %v3474_v6 = vld [vmem:[#allocation2 + $0x334] sm:$0xf0]  ;;  %v2954_v7 = vor.u32 %v3475_v60, %v2951_v61  ;;  %v3774_v60 = vperm.slane %v2785_v57, 0  ;;  %v3776_v61 = vperm.slane %v2785_v57, 1  ;;  %v3495_v57 = vld [vmem:[#allocation2 + $0x3e4] sm:$0xf] }
 0x26d   : > { %v2942_v15 = vor.u32 %v3474_v6, %v2941_v3 }
 0x26e   : > { %823 = vmatmul.bf16.vlgmr.msrb.gmra.mxu0 %v726_v8  ;;  %852 = vmatmul.bf16.vlgmr.msrb.gmra.mxu1 %v726_v8  ;;  %v3457_v8 = vld [vmem:[#allocation2 + $0x2b4] sm:$0xf] }
 0x26f   : > { %1202 = vmatpush.bf16.msra.mxu1 %v2954_v7  ;;  %1145 = vmatpush.bf16.msra.mxu3 %v2942_v15 }
 0x271   : > { %v693_v9 = vpop.f32.mrf.mxu3 }
 0x272   : > { %v694_v11 = vadd.f32 %v693_v9, %v3761_v4  ;;  %v2879_v9 = vld [vmem:[#allocation2 + $0x2b8] sm:$0xf0] }
 0x273   : > { %v2882_v16 = vor.u32 %v3457_v8, %v2879_v9  ;;  %1146 = vmatpush.bf16.msra.mxu3 %v2934_v22 }
 0x275   : > { %1174 = vmatpush.bf16.msra.mxu0 %v2882_v16 }
 0x277   : > { %1147 = vmatpush.bf16.msra.mxu3 %v2926_v38 }
 0x279   : > { %v695_v10 = vpop.f32.mrf.mxu3  ;;  %1175 = vmatpush.bf16.msra.mxu0 %v2874_v30 }
 0x27a   : > { %v696_v12 = vadd.f32 %v695_v10, %v3761_v4  ;;  %v2878_v10 = vor.u32 %v3458_v1, %v2877_v0 }
 0x27b   : > { %1148 = vmatpush.bf16.msra.mxu3 %v2918_v52  ;;  %v3513_v52 = vld [vmem:[#allocation2 + $0x474] sm:$0xf] }
 0x27c   : > { %v727_v13 = vpack.c.bf16 %v696_v12, %v694_v11  ;;  %v3473_v11 = vld [vmem:[#allocation2 + $0x334] sm:$0xf]  ;;  %v2943_v12 = vld [vmem:[#allocation2 + $0x338] sm:$0xf0]  ;;  %1116 = vmatpush.bf16.msrb.mxu2 %v2878_v10 }
 0x27d   : > { %v2946_v19 = vor.u32 %v3473_v11, %v2943_v12  ;;  %1176 = vmatpush.bf16.msra.mxu0 %v2866_v41  ;;  %v3030_v41 = vld [vmem:[#allocation2 + $0x3e0] sm:$0xf] }
 0x27e   : > { %828 = vmatmul.bf16.gmra.mxu0 %v727_v13  ;;  %857 = vmatmul.bf16.gmra.mxu1 %v727_v13  ;;  %v2869_v13 = vld [vmem:[#allocation2 + $0x2a0] sm:$0xf] }
 0x27f   : > { %v2870_v21 = vor.u32 %v3456_v14, %v2869_v13  ;;  %1203 = vmatpush.bf16.msra.mxu1 %v2946_v19 }
 0x281   : > { %v698_v25 = vpop.f32.mrf.mxu3  ;;  %1117 = vmatpush.bf16.msrb.mxu2 %v2870_v21  ;;  %1177 = vmatpush.bf16.msra.mxu0 %v2858_v53  ;;  %v3104_v53 = vld [vmem:[#allocation2 + $0x478] sm:$0xf0] }
 0x282   : > { %v699_v62 = vadd.f32 %v698_v25, %v3761_v4  ;;  %v3107_v55 = vor.u32 %v3513_v52, %v3104_v53 }
 0x283   : > { %1204 = vmatpush.bf16.msra.mxu1 %v2938_v35  ;;  %v3038_v35 = vld [vmem:[#allocation2 + $0x3f0] sm:$0xf] }
 0x285   : > { %1118 = vmatpush.bf16.msrb.mxu2 %v2862_v36  ;;  %v3498_v36 = vld [vmem:[#allocation2 + $0x3f4] sm:$0xf0] }
 0x286   : > { %v3039_v39 = vor.u32 %v3498_v36, %v3038_v35  ;;  %v3490_v35 = vld [vmem:[#allocation2 + $0x3b4] sm:$0xf0] }
 0x289   : > { %v700_v58 = vpop.f32.mrf.mxu3  ;;  %1119 = vmatpush.bf16.msrb.mxu2 %v2854_v48  ;;  %v3094_v48 = vld [vmem:[#allocation2 + $0x460] sm:$0xf] }
 0x28a   : > { %v701_v63 = vadd.f32 %v700_v58, %v3761_v4  ;;  %v3095_v51 = vor.u32 %v3512_v49, %v3094_v48 }
 0x28c   : > { %v728_v5 = vpack.c.bf16 %v701_v63, %v699_v62 }
 0x28d   : > { %1467 = vmatpush.bf16.msra.mxu2 %v3039_v39  ;;  %v3507_v39 = vld [vmem:[#allocation2 + $0x444] sm:$0xf] }
 0x28e   : > { %833 = vmatmul.bf16.gmra.mxu0 %v728_v5  ;;  %862 = vmatmul.bf16.gmra.mxu1 %v728_v5 }
 0x291   : > { %v703_v20 = vpop.f32.mrf.mxu3 }
 0x292   : > { %v704_v24 = vadd.f32 %v703_v20, %v3761_v4 }
 0x299   : > { %v705_v23 = vpop.f32.mrf.mxu3 }
 0x29a   : > { %v706_v25 = vadd.f32 %v705_v23, %v3761_v4  ;;  %v3469_v4 = vld [vmem:[#allocation2 + $0x314] sm:$0xf] }
 0x29b   : > { %v2930_v43 = vor.u32 %v3469_v4, %v2927_v42  ;;  %v3103_v4 = vor.u32 %v3514_v40, %v3102_v37  ;;  %v3496_v42 = vld [vmem:[#allocation2 + $0x3e4] sm:$0xf0]  ;;  %v3070_v37 = vld [vmem:[#allocation2 + $0x430] sm:$0xf]  ;;  %v3080_v40 = vld [vmem:[#allocation2 + $0x448] sm:$0xf0] }
 0x29c   : > { %v729_v26 = vpack.c.bf16 %v706_v25, %v704_v24  ;;  %v3031_v45 = vor.u32 %v3496_v42, %v3030_v41  ;;  %v3083_v42 = vor.u32 %v3507_v39, %v3080_v40 }
 0x29d   : > { %1205 = vmatpush.bf16.msra.mxu1 %v2930_v43  ;;  %v3497_v43 = vld [vmem:[#allocation2 + $0x3f4] sm:$0xf]  ;;  %1496 = vmatpush.bf16.msrb.mxu3 %v3103_v4 }
 0x29e   : > { %838 = vmatmul.bf16.gmra.mxu0 %v729_v26  ;;  %867 = vmatmul.bf16.gmra.mxu1 %v729_v26  ;;  %v3043_v50 = vor.u32 %v3497_v43, %v3040_v46 }
 0x29f   : > { %1468 = vmatpush.bf16.msra.mxu2 %v3031_v45 }
 0x2a0   : > { %1525 = vmatpush.bf16.msrb.mxu0 %v3043_v50 }
 0x2a1   : > { %1206 = vmatpush.bf16.msra.mxu1 %v2922_v56  ;;  %v3494_v56 = vld [vmem:[#allocation2 + $0x3d4] sm:$0xf0]  ;;  %1497 = vmatpush.bf16.msrb.mxu3 %v3095_v51 }
 0x2a5   : > { %1554 = vmatpush.bf16.msrb.mxu1 %v3107_v55 }
 0x2eb   : > { %v824_v58 = vpop.f32.mrf.mxu0  ;;  %v853_v59 = vpop.f32.mrf.mxu1 }
 0x2ec   : > { %v825_v62 = vadd.f32 %v824_v58, %v3774_v60  ;;  %v854_v63 = vadd.f32 %v853_v59, %v3776_v61  ;;  %v3032_v58 = vld [vmem:[#allocation2 + $0x3e8] sm:$0xf0] }
 0x2ee   : > { %v873_v47 = vmul.f32 0.01, %v825_v62  ;;  %v874_v2 = vmul.f32 0.01, %v854_v63 }
 0x2f0   : > { %v889_v8 = vmax.f32 %v825_v62, %v873_v47  ;;  %v890_v9 = vmax.f32 %v854_v63, %v874_v2  ;;  %v3035_v63 = vor.u32 %v3495_v57, %v3032_v58  ;;  %v3511_v47 = vld [vmem:[#allocation2 + $0x464] sm:$0xf] }
 0x2f2   : > { %1526 = vmatpush.bf16.msrb.mxu0 %v3035_v63  ;;  %v3072_v63 = vld [vmem:[#allocation2 + $0x438] sm:$0xf0] }
 0x2f3   : > { %v826_v0 = vpop.f32.mrf.mxu0  ;;  %v855_v1 = vpop.f32.mrf.mxu1 }
 0x2f4   : > { %v827_v3 = vadd.f32 %v826_v0, %v3774_v60  ;;  %v856_v5 = vadd.f32 %v855_v1, %v3776_v61  ;;  %v3086_v0 = vld [vmem:[#allocation2 + $0x450] sm:$0xf]  ;;  %v3510_v1 = vld [vmem:[#allocation2 + $0x454] sm:$0xf0] }
 0x2f6   : > { %v875_v6 = vmul.f32 0.01, %v827_v3  ;;  %v876_v7 = vmul.f32 0.01, %v856_v5 }
 0x2f8   : > { %v891_v10 = vmax.f32 %v827_v3, %v875_v6  ;;  %v892_v11 = vmax.f32 %v856_v5, %v876_v7  ;;  %v3023_v6 = vor.u32 %v3494_v56, %v3022_v54  ;;  %v3096_v7 = vld [vmem:[#allocation2 + $0x468] sm:$0xf0] }
 0x2fa   : > { %v906_v12 = vpack.c.bf16 %v892_v11, %v890_v9  ;;  %v905_v13 = vpack.c.bf16 %v891_v10, %v889_v8  ;;  %v3087_v8 = vor.u32 %v3510_v1, %v3086_v0  ;;  %v3099_v9 = vor.u32 %v3511_v47, %v3096_v7  ;;  %v3014_v10 = vld [vmem:[#allocation2 + $0x3c0] sm:$0xf]  ;;  %v3493_v11 = vld [vmem:[#allocation2 + $0x3d4] sm:$0xf]  ;;  %1469 = vmatpush.bf16.msra.mxu2 %v3023_v6 }
 0x2fb   : > { %v829_v14 = vpop.f32.mrf.mxu0  ;;  %v858_v15 = vpop.f32.mrf.mxu1  ;;  %v3062_v1 = vld [vmem:[#allocation2 + $0x420] sm:$0xf]  ;;  %v3489_v6 = vld [vmem:[#allocation2 + $0x3b4] sm:$0xf] }
 0x2fc   : > { %1120 = vmatmul.bf16.vlgmr.msrb.gmra.mxu2 %v905_v13  ;;  %1149 = vmatmul.bf16.vlgmr.msra.gmra.mxu3 %v906_v12  ;;  %v830_v16 = vadd.f32 %v829_v14, %v3774_v60  ;;  %v859_v17 = vadd.f32 %v858_v15, %v3776_v61  ;;  %v3492_v15 = vld [vmem:[#allocation2 + $0x3c4] sm:$0xf0] }
 0x2fd   : > { %1178 = vmatmul.bf16.vlgmr.msra.gmra.mxu0 %v905_v13  ;;  %1207 = vmatmul.bf16.vlgmr.msra.gmra.mxu1 %v906_v12  ;;  %v3024_v12 = vld [vmem:[#allocation2 + $0x3d8] sm:$0xf0] }
 0x2fe   : > { %v877_v20 = vmul.f32 0.01, %v830_v16  ;;  %v878_v21 = vmul.f32 0.01, %v859_v17  ;;  %1555 = vmatpush.bf16.msrb.mxu1 %v3099_v9  ;;  %1498 = vmatpush.bf16.msrb.mxu3 %v3087_v8  ;;  %v3008_v9 = vld [vmem:[#allocation2 + $0x3b8] sm:$0xf0] }
 0x300   : > { %v893_v26 = vmax.f32 %v830_v16, %v877_v20  ;;  %v894_v27 = vmax.f32 %v859_v17, %v878_v21  ;;  %v3027_v17 = vor.u32 %v3493_v11, %v3024_v12  ;;  %v3509_v20 = vld [vmem:[#allocation2 + $0x454] sm:$0xf]  ;;  %v3054_v11 = vld [vmem:[#allocation2 + $0x410] sm:$0xf]  ;;  %v3502_v12 = vld [vmem:[#allocation2 + $0x414] sm:$0xf0] }
 0x302   : > { %1527 = vmatpush.bf16.msrb.mxu0 %v3027_v17  ;;  %v3000_v17 = vld [vmem:[#allocation2 + $0x3a8] sm:$0xf0] }
 0x303   : > { %v831_v18 = vpop.f32.mrf.mxu0  ;;  %v860_v19 = vpop.f32.mrf.mxu1 }
 0x304   : > { %v832_v22 = vadd.f32 %v831_v18, %v3774_v60  ;;  %v861_v23 = vadd.f32 %v860_v19, %v3776_v61  ;;  %v3078_v18 = vld [vmem:[#allocation2 + $0x440] sm:$0xf]  ;;  %v3508_v19 = vld [vmem:[#allocation2 + $0x444] sm:$0xf0] }
 0x306   : > { %v879_v24 = vmul.f32 0.01, %v832_v22  ;;  %v880_v25 = vmul.f32 0.01, %v861_v23 }
 0x308   : > { %v895_v28 = vmax.f32 %v832_v22, %v879_v24  ;;  %v896_v29 = vmax.f32 %v861_v23, %v880_v25  ;;  %v3088_v24 = vld [vmem:[#allocation2 + $0x458] sm:$0xf0]  ;;  %v3491_v25 = vld [vmem:[#allocation2 + $0x3c4] sm:$0xf] }
 0x30a   : > { %v907_v30 = vpack.c.bf16 %v895_v28, %v893_v26  ;;  %v908_v31 = vpack.c.bf16 %v896_v29, %v894_v27  ;;  %v3016_v26 = vld [vmem:[#allocation2 + $0x3c8] sm:$0xf0]  ;;  %v3015_v29 = vor.u32 %v3492_v15, %v3014_v10  ;;  %v3011_v10 = vor.u32 %v3489_v6, %v3008_v9  ;;  %v3056_v15 = vld [vmem:[#allocation2 + $0x418] sm:$0xf0] }
 0x30b   : > { %v834_v32 = vpop.f32.mrf.mxu0  ;;  %v863_v33 = vpop.f32.mrf.mxu1  ;;  %v3019_v36 = vor.u32 %v3491_v25, %v3016_v26  ;;  %v2990_v25 = vld [vmem:[#allocation2 + $0x390] sm:$0xf]  ;;  %v3486_v26 = vld [vmem:[#allocation2 + $0x394] sm:$0xf0] }
 0x30c   : > { %v3787_v34 = vadd.f32 %v834_v32, %v3774_v60  ;;  %1125 = vmatmul.bf16.gmra.mxu2 %v907_v30  ;;  %1154 = vmatmul.bf16.gmra.mxu3 %v908_v31  ;;  %v864_v44 = vadd.f32 %v863_v33, %v3776_v61 }
 0x30d   : > { %1183 = vmatmul.bf16.gmra.mxu0 %v907_v30  ;;  %1212 = vmatmul.bf16.gmra.mxu1 %v908_v31  ;;  %v3079_v30 = vor.u32 %v3508_v19, %v3078_v18  ;;  %v3006_v31 = vld [vmem:[#allocation2 + $0x3b0] sm:$0xf] }
 0x30e   : > { %v881_v38 = vmul.f32 0.01, %v3787_v34  ;;  %v882_v2 = vmul.f32 0.01, %v864_v44  ;;  %1470 = vmatpush.bf16.msra.mxu2 %v3015_v29  ;;  %v3007_v4 = vor.u32 %v3490_v35, %v3006_v31  ;;  %1528 = vmatpush.bf16.msrb.mxu0 %v3019_v36  ;;  %v2991_v29 = vor.u32 %v3486_v26, %v2990_v25  ;;  %v2984_v36 = vld [vmem:[#allocation2 + $0x388] sm:$0xf0] }
 0x30f   : > { %1499 = vmatpush.bf16.msrb.mxu3 %v3079_v30  ;;  %v2992_v30 = vld [vmem:[#allocation2 + $0x398] sm:$0xf0] }
 0x310   : > { %v897_v16 = vmax.f32 %v3787_v34, %v881_v38  ;;  %v898_v21 = vmax.f32 %v864_v44, %v882_v2  ;;  %v3091_v34 = vor.u32 %v3509_v20, %v3088_v24  ;;  %v3506_v38 = vld [vmem:[#allocation2 + $0x434] sm:$0xf0]  ;;  %v3064_v2 = vld [vmem:[#allocation2 + $0x428] sm:$0xf0]  ;;  %v3046_v20 = vld [vmem:[#allocation2 + $0x400] sm:$0xf] }
 0x311   : > { %v3071_v41 = vor.u32 %v3506_v38, %v3070_v37  ;;  %v3048_v24 = vld [vmem:[#allocation2 + $0x408] sm:$0xf0] }
 0x312   : > { %1556 = vmatpush.bf16.msrb.mxu1 %v3091_v34  ;;  %1471 = vmatpush.bf16.msra.mxu2 %v3007_v4  ;;  %v3483_v34 = vld [vmem:[#allocation2 + $0x384] sm:$0xf] }
 0x313   : > { %v836_v59 = vpop.f32.mrf.mxu0  ;;  %v865_v62 = vpop.f32.mrf.mxu1  ;;  %1500 = vmatpush.bf16.msrb.mxu3 %v3071_v41  ;;  %1529 = vmatpush.bf16.msrb.mxu0 %v3011_v10  ;;  %v2987_v37 = vor.u32 %v3483_v34, %v2984_v36  ;;  %v2850_v38 = vld [vmem:[%s3909_s3 + $0x5] ss:$8 sm:$0x3] }
 0x314   : > { %v837_v3 = vadd.f32 %v836_v59, %v3774_v60  ;;  %v866_v5 = vadd.f32 %v865_v62, %v3776_v61  ;;  %v3505_v62 = vld [vmem:[#allocation2 + $0x434] sm:$0xf]  ;;  %v3801_v39 = vperm.slane %v2850_v38, 1 }
 0x315   : > { %v3075_v0 = vor.u32 %v3505_v62, %v3072_v63 }
 0x316   : > { %v883_v13 = vmul.f32 0.01, %v837_v3  ;;  %v884_v14 = vmul.f32 0.01, %v866_v5  ;;  %1557 = vmatpush.bf16.msrb.mxu1 %v3083_v42  ;;  %v3804_v42 = vperm.slane %v2850_v38, 0 }
 0x317   : > { %v3529_v38 = vld [vmem:[#allocation2 + $0x4f4] sm:$0xf] }
 0x318   : > { %v899_v22 = vmax.f32 %v837_v3, %v883_v13  ;;  %v900_v23 = vmax.f32 %v866_v5, %v884_v14  ;;  %v2998_v3 = vld [vmem:[#allocation2 + $0x3a0] sm:$0xf]  ;;  %v3488_v5 = vld [vmem:[#allocation2 + $0x3a4] sm:$0xf0]  ;;  %v3501_v13 = vld [vmem:[#allocation2 + $0x414] sm:$0xf]  ;;  %v3055_v14 = vor.u32 %v3502_v12, %v3054_v11 }
 0x319   : > { %v2999_v8 = vor.u32 %v3488_v5, %v2998_v3  ;;  %v3059_v18 = vor.u32 %v3501_v13, %v3056_v15 }
 0x31a   : > { %v909_v27 = vpack.c.bf16 %v899_v22, %v897_v16  ;;  %v910_v28 = vpack.c.bf16 %v900_v23, %v898_v21  ;;  %1558 = vmatpush.bf16.msrb.mxu1 %v3075_v0  ;;  %v3487_v16 = vld [vmem:[#allocation2 + $0x3a4] sm:$0xf]  ;;  %v3500_v21 = vld [vmem:[#allocation2 + $0x404] sm:$0xf0] }
 0x31b   : > { %v839_v32 = vpop.f32.mrf.mxu0  ;;  %v868_v33 = vpop.f32.mrf.mxu1  ;;  %1472 = vmatpush.bf16.msra.mxu2 %v2999_v8  ;;  %v3003_v19 = vor.u32 %v3487_v16, %v3000_v17  ;;  %v3499_v22 = vld [vmem:[#allocation2 + $0x404] sm:$0xf]  ;;  %v3047_v23 = vor.u32 %v3500_v21, %v3046_v20 }
 0x31c   : > { %1130 = vmatmul.bf16.gmra.mxu2 %v909_v27  ;;  %1159 = vmatmul.bf16.gmra.mxu3 %v910_v28  ;;  %v840_v43 = vadd.f32 %v839_v32, %v3774_v60  ;;  %v869_v44 = vadd.f32 %v868_v33, %v3776_v61  ;;  %v2982_v32 = vld [vmem:[#allocation2 + $0x380] sm:$0xf]  ;;  %v3484_v33 = vld [vmem:[#allocation2 + $0x384] sm:$0xf0] }
 0x31d   : > { %1188 = vmatmul.bf16.gmra.mxu0 %v909_v27  ;;  %1217 = vmatmul.bf16.gmra.mxu1 %v910_v28  ;;  %v3051_v27 = vor.u32 %v3499_v22, %v3048_v24  ;;  %v3485_v28 = vld [vmem:[#allocation2 + $0x394] sm:$0xf]  ;;  %v2983_v35 = vor.u32 %v3484_v33, %v2982_v32 }
 0x31e   : > { %v885_v48 = vmul.f32 0.01, %v840_v43  ;;  %v886_v49 = vmul.f32 0.01, %v869_v44  ;;  %1530 = vmatpush.bf16.msrb.mxu0 %v3003_v19  ;;  %v2995_v31 = vor.u32 %v3485_v28, %v2992_v30 }
 0x31f   : > { %1473 = vmatpush.bf16.msra.mxu2 %v2991_v29 }
 0x320   : > { %v901_v54 = vmax.f32 %v840_v43, %v885_v48  ;;  %v902_v55 = vmax.f32 %v869_v44, %v886_v49 }
 0x322   : > { %1531 = vmatpush.bf16.msrb.mxu0 %v2995_v31 }
 0x323   : > { %v841_v45 = vpop.f32.mrf.mxu0  ;;  %v870_v46 = vpop.f32.mrf.mxu1  ;;  %1474 = vmatpush.bf16.msra.mxu2 %v2983_v35 }
 0x324   : > { %v842_v50 = vadd.f32 %v841_v45, %v3774_v60  ;;  %v871_v51 = vadd.f32 %v870_v46, %v3776_v61  ;;  %v3504_v60 = vld [vmem:[#allocation2 + $0x424] sm:$0xf0]  ;;  %v3503_v61 = vld [vmem:[#allocation2 + $0x424] sm:$0xf] }
 0x325   : > { %v3063_v47 = vor.u32 %v3504_v60, %v3062_v1  ;;  %v3067_v7 = vor.u32 %v3503_v61, %v3064_v2 }
 0x326   : > { %v887_v52 = vmul.f32 0.01, %v842_v50  ;;  %v888_v53 = vmul.f32 0.01, %v871_v51  ;;  %1532 = vmatpush.bf16.msrb.mxu0 %v2987_v37 }
 0x327   : > { %1501 = vmatpush.bf16.msrb.mxu3 %v3063_v47  ;;  %1559 = vmatpush.bf16.msrb.mxu1 %v3067_v7 }
 0x328   : > { %v903_v56 = vmax.f32 %v842_v50, %v887_v52  ;;  %v904_v57 = vmax.f32 %v871_v51, %v888_v53 }
 0x32a   : > { %v911_v58 = vpack.c.bf16 %v903_v56, %v901_v54  ;;  %v912_v59 = vpack.c.bf16 %v904_v57, %v902_v55 }
 0x32b   : > { %1502 = vmatpush.bf16.msrb.mxu3 %v3055_v14  ;;  %1560 = vmatpush.bf16.msrb.mxu1 %v3059_v18 }
 0x32c   : > { %1135 = vmatmul.bf16.gmra.mxu2 %v911_v58  ;;  %1164 = vmatmul.bf16.gmra.mxu3 %v912_v59 }
 0x32d   : > { %1193 = vmatmul.bf16.gmra.mxu0 %v911_v58  ;;  %1222 = vmatmul.bf16.gmra.mxu1 %v912_v59 }
 0x32f   : > { %1503 = vmatpush.bf16.msrb.mxu3 %v3047_v23  ;;  %1561 = vmatpush.bf16.msrb.mxu1 %v3051_v27 }
 0x37a   : > { %v1179_v40 = vpop.f32.mrf.mxu0  ;;  %v1208_v4 = vpop.f32.mrf.mxu1 }
 0x37b   : > { %v1180_v41 = vadd.f32 %v1179_v40, %v3801_v39  ;;  %v3169_v40 = vld [vmem:[#allocation2 + $0x4f8] sm:$0xf0] }
 0x37d   : > { %v1209_v45 = vadd.f32 %v1208_v4, %v1180_v41  ;;  %v3545_v4 = vld [vmem:[#allocation2 + $0x574] sm:$0xf] }
 0x37f   : > { %v1121_v43 = vpop.f32.mrf.mxu2  ;;  %v1150_v44 = vpop.f32.mrf.mxu3  ;;  %v1229_v51 = vmul.f32 0.01, %v1209_v45 }
 0x380   : > { %v1122_v46 = vadd.f32 %v1121_v43, %v3804_v42  ;;  %v3172_v43 = vor.u32 %v3529_v38, %v3169_v40 }
 0x381   : > { %v1245_v58 = vmax.f32 %v1209_v45, %v1229_v51  ;;  %v3167_v45 = vld [vmem:[#allocation2 + $0x4f0] sm:$0xf]  ;;  %v3527_v51 = vld [vmem:[#allocation2 + $0x4e4] sm:$0xf] }
 0x382   : > { %v1181_v48 = vpop.f32.mrf.mxu0  ;;  %v1210_v49 = vpop.f32.mrf.mxu1  ;;  %v1151_v53 = vadd.f32 %v1150_v44, %v1122_v46  ;;  %v3233_v44 = vld [vmem:[#allocation2 + $0x578] sm:$0xf0]  ;;  %v3530_v46 = vld [vmem:[#allocation2 + $0x4f4] sm:$0xf0]  ;;  %1880 = vmatpush.bf16.msra.mxu0 %v3172_v43 }
 0x383   : > { %v1182_v50 = vadd.f32 %v1181_v48, %v3801_v39 }
 0x384   : > { %v1228_v62 = vmul.f32 0.01, %v1151_v53 }
 0x385   : > { %v1211_v52 = vadd.f32 %v1210_v49, %v1182_v50  ;;  %v3236_v49 = vor.u32 %v3545_v4, %v3233_v44  ;;  %v3168_v50 = vor.u32 %v3530_v46, %v3167_v45  ;;  %v3521_v44 = vld [vmem:[#allocation2 + $0x4b4] sm:$0xf]  ;;  %v3137_v45 = vld [vmem:[#allocation2 + $0x4b8] sm:$0xf0] }
 0x386   : > { %v1244_v2 = vmax.f32 %v1151_v53, %v1228_v62  ;;  %v3225_v62 = vld [vmem:[#allocation2 + $0x568] sm:$0xf0] }
 0x387   : > { %v1231_v54 = vmul.f32 0.01, %v1211_v52  ;;  %v1123_v55 = vpop.f32.mrf.mxu2  ;;  %v1152_v56 = vpop.f32.mrf.mxu3  ;;  %1909 = vmatpush.bf16.msra.mxu1 %v3236_v49  ;;  %1822 = vmatpush.bf16.msrb.mxu2 %v3168_v50 }
 0x388   : > { %v1124_v57 = vadd.f32 %v1123_v55, %v3804_v42  ;;  %v3231_v55 = vld [vmem:[#allocation2 + $0x570] sm:$0xf] }
 0x389   : > { %v1247_v59 = vmax.f32 %v1211_v52, %v1231_v54  ;;  %v3161_v52 = vld [vmem:[#allocation2 + $0x4e8] sm:$0xf0] }
 0x38a   : > { %v1153_v63 = vadd.f32 %v1152_v56, %v1124_v57  ;;  %v1184_v0 = vpop.f32.mrf.mxu0  ;;  %v1213_v1 = vpop.f32.mrf.mxu1  ;;  %v3164_v54 = vor.u32 %v3527_v51, %v3161_v52  ;;  %v3546_v56 = vld [vmem:[#allocation2 + $0x574] sm:$0xf0]  ;;  %v3543_v57 = vld [vmem:[#allocation2 + $0x564] sm:$0xf]  ;;  %v3140_v51 = vor.u32 %v3521_v44, %v3137_v45 }
 0x38b   : > { %v1261_v60 = vpack.c.bf16 %v1247_v59, %v1245_v58  ;;  %v1185_v61 = vadd.f32 %v1184_v0, %v3801_v39  ;;  %v3232_v59 = vor.u32 %v3546_v56, %v3231_v55  ;;  %v3528_v0 = vld [vmem:[#allocation2 + $0x4e4] sm:$0xf0]  ;;  %v3518_v44 = vld [vmem:[#allocation2 + $0x494] sm:$0xf0] }
 0x38c   : > { %v1230_v47 = vmul.f32 0.01, %v1153_v63  ;;  %1881 = vmatpush.bf16.msra.mxu0 %v3164_v54 }
 0x38d   : > { %1504 = vmatmul.bf16.vlgmr.msrb.gmra.mxu3 %v1261_v60  ;;  %1562 = vmatmul.bf16.vlgmr.msrb.gmra.mxu1 %v1261_v60  ;;  %v1214_v8 = vadd.f32 %v1213_v1, %v1185_v61  ;;  %v3228_v61 = vor.u32 %v3543_v57, %v3225_v62 }
 0x38e   : > { %v1246_v3 = vmax.f32 %v1153_v63, %v1230_v47  ;;  %v3159_v63 = vld [vmem:[#allocation2 + $0x4e0] sm:$0xf]  ;;  %1851 = vmatpush.bf16.msra.mxu3 %v3232_v59 }
 0x38f   : > { %v1126_v5 = vpop.f32.mrf.mxu2  ;;  %v1155_v6 = vpop.f32.mrf.mxu3  ;;  %v1233_v13 = vmul.f32 0.01, %v1214_v8  ;;  %1910 = vmatpush.bf16.msra.mxu1 %v3228_v61 }
 0x390   : > { %v1260_v7 = vpack.c.bf16 %v1246_v3, %v1244_v2  ;;  %v1127_v9 = vadd.f32 %v1126_v5, %v3804_v42  ;;  %v3160_v2 = vor.u32 %v3528_v0, %v3159_v63  ;;  %v3525_v3 = vld [vmem:[#allocation2 + $0x4d4] sm:$0xf]  ;;  %v3153_v5 = vld [vmem:[#allocation2 + $0x4d8] sm:$0xf0] }
 0x391   : > { %v1249_v20 = vmax.f32 %v1214_v8, %v1233_v13  ;;  %v3544_v8 = vld [vmem:[#allocation2 + $0x564] sm:$0xf0]  ;;  %v3217_v13 = vld [vmem:[#allocation2 + $0x558] sm:$0xf0] }
 0x392   : > { %v1186_v10 = vpop.f32.mrf.mxu0  ;;  %v1215_v11 = vpop.f32.mrf.mxu1  ;;  %1475 = vmatmul.bf16.vlgmr.msra.gmra.mxu2 %v1260_v7  ;;  %1533 = vmatmul.bf16.vlgmr.msrb.gmra.mxu0 %v1260_v7  ;;  %v1156_v15 = vadd.f32 %v1155_v6, %v1127_v9  ;;  %v3223_v7 = vld [vmem:[#allocation2 + $0x560] sm:$0xf]  ;;  %v3541_v9 = vld [vmem:[#allocation2 + $0x554] sm:$0xf] }
 0x393   : > { %v1187_v12 = vadd.f32 %v1186_v10, %v3801_v39  ;;  %1823 = vmatpush.bf16.msrb.mxu2 %v3160_v2 }
 0x394   : > { %v1232_v22 = vmul.f32 0.01, %v1156_v15 }
 0x395   : > { %v1216_v14 = vadd.f32 %v1215_v11, %v1187_v12  ;;  %v3224_v12 = vor.u32 %v3544_v8, %v3223_v7  ;;  %v3201_v8 = vld [vmem:[#allocation2 + $0x538] sm:$0xf0] }
 0x396   : > { %v1248_v29 = vmax.f32 %v1156_v15, %v1232_v22  ;;  %v3526_v15 = vld [vmem:[#allocation2 + $0x4d4] sm:$0xf0]  ;;  %v3215_v22 = vld [vmem:[#allocation2 + $0x550] sm:$0xf] }
 0x397   : > { %v1235_v16 = vmul.f32 0.01, %v1216_v14  ;;  %v1128_v17 = vpop.f32.mrf.mxu2  ;;  %v1157_v18 = vpop.f32.mrf.mxu3  ;;  %1852 = vmatpush.bf16.msra.mxu3 %v3224_v12  ;;  %v3535_v12 = vld [vmem:[#allocation2 + $0x524] sm:$0xf] }
 0x398   : > { %v1129_v19 = vadd.f32 %v1128_v17, %v3804_v42 }
 0x399   : > { %v1251_v21 = vmax.f32 %v1216_v14, %v1235_v16  ;;  %v3151_v14 = vld [vmem:[#allocation2 + $0x4d0] sm:$0xf] }
 0x39a   : > { %v1158_v23 = vadd.f32 %v1157_v18, %v1129_v19  ;;  %v1189_v24 = vpop.f32.mrf.mxu0  ;;  %v1218_v25 = vpop.f32.mrf.mxu1 }
 0x39b   : > { %v1263_v26 = vpack.c.bf16 %v1251_v21, %v1249_v20  ;;  %v1190_v28 = vadd.f32 %v1189_v24, %v3801_v39  ;;  %v3156_v20 = vor.u32 %v3525_v3, %v3153_v5  ;;  %v3220_v21 = vor.u32 %v3541_v9, %v3217_v13  ;;  %v3207_v3 = vld [vmem:[#allocation2 + $0x540] sm:$0xf]  ;;  %v3540_v5 = vld [vmem:[#allocation2 + $0x544] sm:$0xf0]  ;;  %v3199_v9 = vld [vmem:[#allocation2 + $0x530] sm:$0xf] }
 0x39c   : > { %v1234_v27 = vmul.f32 0.01, %v1158_v23  ;;  %v3152_v24 = vor.u32 %v3526_v15, %v3151_v14  ;;  %v3208_v7 = vor.u32 %v3540_v5, %v3207_v3  ;;  %v3193_v13 = vld [vmem:[#allocation2 + $0x528] sm:$0xf0]  ;;  %v3135_v14 = vld [vmem:[#allocation2 + $0x4b0] sm:$0xf] }
 0x39d   : > { %1509 = vmatmul.bf16.gmra.mxu3 %v1263_v26  ;;  %1567 = vmatmul.bf16.gmra.mxu1 %v1263_v26  ;;  %v1219_v33 = vadd.f32 %v1218_v25, %v1190_v28  ;;  %v3523_v25 = vld [vmem:[#allocation2 + $0x4c4] sm:$0xf]  ;;  %v3145_v26 = vld [vmem:[#allocation2 + $0x4c8] sm:$0xf0]  ;;  %v3522_v15 = vld [vmem:[#allocation2 + $0x4b4] sm:$0xf0] }
 0x39e   : > { %v1250_v30 = vmax.f32 %v1158_v23, %v1234_v27  ;;  %v3542_v27 = vld [vmem:[#allocation2 + $0x554] sm:$0xf0]  ;;  %1882 = vmatpush.bf16.msra.mxu0 %v3156_v20  ;;  %1911 = vmatpush.bf16.msra.mxu1 %v3220_v21  ;;  %v3148_v40 = vor.u32 %v3523_v25, %v3145_v26  ;;  %v3191_v20 = vld [vmem:[#allocation2 + $0x520] sm:$0xf]  ;;  %v3536_v21 = vld [vmem:[#allocation2 + $0x524] sm:$0xf0] }
 0x39f   : > { %v1131_v31 = vpop.f32.mrf.mxu2  ;;  %v1160_v32 = vpop.f32.mrf.mxu3  ;;  %v1237_v48 = vmul.f32 0.01, %v1219_v33  ;;  %1824 = vmatpush.bf16.msrb.mxu2 %v3152_v24  ;;  %v3533_v24 = vld [vmem:[#allocation2 + $0x514] sm:$0xf]  ;;  %v3185_v25 = vld [vmem:[#allocation2 + $0x518] sm:$0xf0] }
 0x3a0   : > { %v1262_v34 = vpack.c.bf16 %v1250_v30, %v1248_v29  ;;  %v1132_v35 = vadd.f32 %v1131_v31, %v3804_v42  ;;  %v3216_v29 = vor.u32 %v3542_v27, %v3215_v22  ;;  %v3539_v30 = vld [vmem:[#allocation2 + $0x544] sm:$0xf]  ;;  %v3209_v31 = vld [vmem:[#allocation2 + $0x548] sm:$0xf0]  ;;  %v3183_v26 = vld [vmem:[#allocation2 + $0x510] sm:$0xf]  ;;  %v3188_v27 = vor.u32 %v3533_v24, %v3185_v25 }
 0x3a1   : > { %v1253_v10 = vmax.f32 %v1219_v33, %v1237_v48  ;;  %v3143_v33 = vld [vmem:[#allocation2 + $0x4c0] sm:$0xf]  ;;  %v3212_v4 = vor.u32 %v3539_v30, %v3209_v31  ;;  %v3520_v30 = vld [vmem:[#allocation2 + $0x4a4] sm:$0xf0] }
 0x3a2   : > { %v1191_v36 = vpop.f32.mrf.mxu0  ;;  %v1220_v37 = vpop.f32.mrf.mxu1  ;;  %1480 = vmatmul.bf16.gmra.mxu2 %v1262_v34  ;;  %1538 = vmatmul.bf16.gmra.mxu0 %v1262_v34  ;;  %v1161_v58 = vadd.f32 %v1160_v32, %v1132_v35  ;;  %v3524_v34 = vld [vmem:[#allocation2 + $0x4c4] sm:$0xf0] }
 0x3a3   : > { %v1192_v41 = vadd.f32 %v1191_v36, %v3801_v39  ;;  %1853 = vmatpush.bf16.msra.mxu3 %v3216_v29  ;;  %v3144_v43 = vor.u32 %v3524_v34, %v3143_v33  ;;  %1883 = vmatpush.bf16.msra.mxu0 %v3148_v40  ;;  %v3127_v29 = vld [vmem:[#allocation2 + $0x4a0] sm:$0xf]  ;;  %v3532_v34 = vld [vmem:[#allocation2 + $0x504] sm:$0xf0]  ;;  %v3121_v40 = vld [vmem:[#allocation2 + $0x498] sm:$0xf0] }
 0x3a4   : > { %v1236_v16 = vmul.f32 0.01, %v1161_v58  ;;  %1912 = vmatpush.bf16.msra.mxu1 %v3212_v4  ;;  %v3175_v33 = vld [vmem:[#allocation2 + $0x500] sm:$0xf]  ;;  %v3119_v4 = vld [vmem:[#allocation2 + $0x490] sm:$0xf] }
 0x3a5   : > { %v1221_v53 = vadd.f32 %v1220_v37, %v1192_v41  ;;  %1825 = vmatpush.bf16.msrb.mxu2 %v3144_v43  ;;  %v3120_v45 = vor.u32 %v3518_v44, %v3119_v4 }
 0x3a6   : > { %v1252_v35 = vmax.f32 %v1161_v58, %v1236_v16  ;;  %v3519_v16 = vld [vmem:[#allocation2 + $0x4a4] sm:$0xf] }
 0x3a7   : > { %v1239_v1 = vmul.f32 0.01, %v1221_v53  ;;  %v1133_v60 = vpop.f32.mrf.mxu2  ;;  %v1162_v47 = vpop.f32.mrf.mxu3  ;;  %1884 = vmatpush.bf16.msra.mxu0 %v3140_v51  ;;  %1854 = vmatpush.bf16.msra.mxu3 %v3208_v7  ;;  %v3516_v51 = vld [vmem:[#allocation2 + $0x484] sm:$0xf0] }
 0x3a8   : > { %v1134_v6 = vadd.f32 %v1133_v60, %v3804_v42 }
 0x3a9   : > { %v1255_v11 = vmax.f32 %v1221_v53, %v1239_v1 }
 0x3aa   : > { %v1163_v17 = vadd.f32 %v1162_v47, %v1134_v6  ;;  %v1194_v18 = vpop.f32.mrf.mxu0  ;;  %v1223_v19 = vpop.f32.mrf.mxu1  ;;  %v3537_v6 = vld [vmem:[#allocation2 + $0x534] sm:$0xf] }
 0x3ab   : > { %v1265_v23 = vpack.c.bf16 %v1255_v11, %v1253_v10  ;;  %v1195_v32 = vadd.f32 %v1194_v18, %v3801_v39  ;;  %v3538_v10 = vld [vmem:[#allocation2 + $0x534] sm:$0xf0]  ;;  %v3136_v18 = vor.u32 %v3522_v15, %v3135_v14 }
 0x3ac   : > { %v1238_v28 = vmul.f32 0.01, %v1163_v17  ;;  %v3200_v11 = vor.u32 %v3538_v10, %v3199_v9 }
 0x3ad   : > { %1514 = vmatmul.bf16.gmra.mxu3 %v1265_v23  ;;  %1572 = vmatmul.bf16.gmra.mxu1 %v1265_v23  ;;  %v1224_v46 = vadd.f32 %v1223_v19, %v1195_v32  ;;  %v3129_v19 = vld [vmem:[#allocation2 + $0x4a8] sm:$0xf0]  ;;  %v3192_v23 = vor.u32 %v3536_v21, %v3191_v20  ;;  %v3128_v32 = vor.u32 %v3520_v30, %v3127_v29 }
 0x3ae   : > { %v1254_v36 = vmax.f32 %v1163_v17, %v1238_v28  ;;  %1855 = vmatpush.bf16.msra.mxu3 %v3200_v11  ;;  %v3196_v17 = vor.u32 %v3535_v12, %v3193_v13  ;;  %v3132_v22 = vor.u32 %v3519_v16, %v3129_v19  ;;  %1826 = vmatpush.bf16.msrb.mxu2 %v3136_v18  ;;  %v3534_v28 = vld [vmem:[#allocation2 + $0x514] sm:$0xf0] }
 0x3af   : > { %v1136_v37 = vpop.f32.mrf.mxu2  ;;  %v1165_v38 = vpop.f32.mrf.mxu3  ;;  %v1241_v53 = vmul.f32 0.01, %v1224_v46  ;;  %v3184_v31 = vor.u32 %v3534_v28, %v3183_v26 }
 0x3b0   : > { %v1264_v41 = vpack.c.bf16 %v1254_v36, %v1252_v35  ;;  %v1137_v48 = vadd.f32 %v1136_v37, %v3804_v42  ;;  %1885 = vmatpush.bf16.msra.mxu0 %v3132_v22  ;;  %v3531_v35 = vld [vmem:[#allocation2 + $0x504] sm:$0xf]  ;;  %v3176_v36 = vor.u32 %v3532_v34, %v3175_v33  ;;  %v3177_v37 = vld [vmem:[#allocation2 + $0x508] sm:$0xf0] }
 0x3b1   : > { %v1257_v59 = vmax.f32 %v1224_v46, %v1241_v53  ;;  %v3515_v46 = vld [vmem:[#allocation2 + $0x484] sm:$0xf] }
 0x3b2   : > { %v1196_v49 = vpop.f32.mrf.mxu0  ;;  %1485 = vmatmul.bf16.gmra.mxu2 %v1264_v41  ;;  %1543 = vmatmul.bf16.gmra.mxu0 %v1264_v41  ;;  %v1225_v52 = vpop.f32.mrf.mxu1  ;;  %v1166_v55 = vadd.f32 %v1165_v38, %v1137_v48  ;;  %v3517_v38 = vld [vmem:[#allocation2 + $0x494] sm:$0xf]  ;;  %v3180_v41 = vor.u32 %v3531_v35, %v3177_v37  ;;  %v3113_v48 = vld [vmem:[#allocation2 + $0x488] sm:$0xf0] }
 0x3b3   : > { %v1197_v50 = vadd.f32 %v1196_v49, %v3801_v39  ;;  %1856 = vmatpush.bf16.msra.mxu3 %v3192_v23  ;;  %1827 = vmatpush.bf16.msrb.mxu2 %v3128_v32  ;;  %v3124_v43 = vor.u32 %v3517_v38, %v3121_v40  ;;  %v3111_v49 = vld [vmem:[#allocation2 + $0x480] sm:$0xf] }
 0x3b4   : > { %v1240_v0 = vmul.f32 0.01, %v1166_v55 }
 0x3b5   : > { %v1226_v54 = vadd.f32 %v1225_v52, %v1197_v50  ;;  %1886 = vmatpush.bf16.msra.mxu0 %v3124_v43  ;;  %v3116_v50 = vor.u32 %v3515_v46, %v3113_v48  ;;  %v3112_v52 = vor.u32 %v3516_v51, %v3111_v49 }
 0x3b6   : > { %v1256_v47 = vmax.f32 %v1166_v55, %v1240_v0 }
 0x3b7   : > { %v1243_v56 = vmul.f32 0.01, %v1226_v54  ;;  %v1138_v57 = vpop.f32.mrf.mxu2  ;;  %v1167_v63 = vpop.f32.mrf.mxu3  ;;  %1857 = vmatpush.bf16.msra.mxu3 %v3184_v31  ;;  %1828 = vmatpush.bf16.msrb.mxu2 %v3120_v45 }
 0x3b8   : > { %v1139_v58 = vadd.f32 %v1138_v57, %v3804_v42  ;;  %v3204_v42 = vor.u32 %v3537_v6, %v3201_v8 }
 0x3b9   : > { %v1259_v62 = vmax.f32 %v1226_v54, %v1243_v56  ;;  %1887 = vmatpush.bf16.msra.mxu0 %v3116_v50  ;;  %v2979_v54 = vld [vmem:[%s3909_s3 + $0x6] ss:$8 sm:$0x3] }
 0x3ba   : > { %v1168_v1 = vadd.f32 %v1167_v63, %v1139_v58  ;;  %1913 = vmatpush.bf16.msra.mxu1 %v3204_v42  ;;  %v3824_v55 = vperm.slane %v2979_v54, 1 }
 0x3bb   : > { %v1267_v60 = vpack.c.bf16 %v1259_v62, %v1257_v59  ;;  %1858 = vmatpush.bf16.msra.mxu3 %v3176_v36  ;;  %1829 = vmatpush.bf16.msrb.mxu2 %v3112_v52  ;;  %v3827_v62 = vperm.slane %v2979_v54, 0  ;;  %v3267_v54 = vld [vmem:[#allocation2 + $0x5f0] sm:$0xf] }
 0x3bc   : > { %v1242_v39 = vmul.f32 0.01, %v1168_v1 }
 0x3bd   : > { %1519 = vmatmul.bf16.gmra.mxu3 %v1267_v60  ;;  %1577 = vmatmul.bf16.gmra.mxu1 %v1267_v60 }
 0x3be   : > { %v1258_v61 = vmax.f32 %v1168_v1, %v1242_v39  ;;  %1914 = vmatpush.bf16.msra.mxu1 %v3196_v17 }
 0x3c0   : > { %v1266_v2 = vpack.c.bf16 %v1258_v61, %v1256_v47 }
 0x3c2   : > { %1490 = vmatmul.bf16.gmra.mxu2 %v1266_v2  ;;  %1548 = vmatmul.bf16.gmra.mxu0 %v1266_v2 }
 0x3c3   : > { %1915 = vmatpush.bf16.msra.mxu1 %v3188_v27 }
 0x3c7   : > { %1916 = vmatpush.bf16.msra.mxu1 %v3180_v41 }
 0x40a   : > { %v1563_v53 = vpop.f32.mrf.mxu1 }
 0x40f   : > { %v1534_v56 = vpop.f32.mrf.mxu0 }
 0x410   : > { %v1505_v57 = vpop.f32.mrf.mxu3  ;;  %v1535_v58 = vadd.f32 %v1534_v56, %v3824_v55  ;;  %v3554_v56 = vld [vmem:[#allocation2 + $0x5f4] sm:$0xf0] }
 0x412   : > { %v1565_v59 = vpop.f32.mrf.mxu1  ;;  %v1564_v0 = vadd.f32 %v1563_v53, %v1535_v58  ;;  %v3268_v58 = vor.u32 %v3554_v56, %v3267_v54  ;;  %v3547_v54 = vld [vmem:[#allocation2 + $0x584] sm:$0xf0] }
 0x414   : > { %v1584_v61 = vmul.f32 0.01, %v1564_v0  ;;  %2055 = vmatpush.bf16.msra.mxu2 %v3268_v58 }
 0x415   : > { %v1476_v63 = vpop.f32.mrf.mxu2 }
 0x416   : > { %v1477_v60 = vadd.f32 %v1476_v63, %v3827_v62  ;;  %v1600_v8 = vmax.f32 %v1564_v0, %v1584_v61  ;;  %v3259_v61 = vld [vmem:[#allocation2 + $0x5d0] sm:$0xf] }
 0x417   : > { %v1536_v1 = vpop.f32.mrf.mxu0 }
 0x418   : > { %v1507_v39 = vpop.f32.mrf.mxu3  ;;  %v1537_v47 = vadd.f32 %v1536_v1, %v3824_v55  ;;  %v1506_v5 = vadd.f32 %v1505_v57, %v1477_v60  ;;  %v3263_v57 = vld [vmem:[#allocation2 + $0x5e0] sm:$0xf] }
 0x41a   : > { %v1566_v2 = vadd.f32 %v1565_v59, %v1537_v47  ;;  %v1568_v3 = vpop.f32.mrf.mxu1  ;;  %v1583_v11 = vmul.f32 0.01, %v1506_v5  ;;  %v3553_v59 = vld [vmem:[#allocation2 + $0x5e4] sm:$0xf0] }
 0x41b   : > { %v3264_v60 = vor.u32 %v3553_v59, %v3263_v57  ;;  %v3108_v57 = vld [vmem:[%s3909_s3 + $0x7] ss:$8 sm:$0x3] }
 0x41c   : > { %v1586_v6 = vmul.f32 0.01, %v1566_v2  ;;  %v1599_v18 = vmax.f32 %v1506_v5, %v1583_v11  ;;  %v3847_v59 = vperm.slane %v3108_v57, 1 }
 0x41d   : > { %v1478_v7 = vpop.f32.mrf.mxu2  ;;  %2056 = vmatpush.bf16.msra.mxu2 %v3264_v60 }
 0x41e   : > { %v1602_v42 = vmax.f32 %v1566_v2, %v1586_v6  ;;  %v1479_v9 = vadd.f32 %v1478_v7, %v3827_v62  ;;  %v3552_v2 = vld [vmem:[#allocation2 + $0x5d4] sm:$0xf0] }
 0x41f   : > { %v1539_v10 = vpop.f32.mrf.mxu0 }
 0x420   : > { %v1616_v12 = vpack.c.bf16 %v1602_v42, %v1600_v8  ;;  %v1508_v13 = vadd.f32 %v1507_v39, %v1479_v9  ;;  %v1510_v14 = vpop.f32.mrf.mxu3  ;;  %v1540_v16 = vadd.f32 %v1539_v10, %v3824_v55  ;;  %v3260_v9 = vor.u32 %v3552_v2, %v3259_v61 }
 0x422   : > { %v1585_v15 = vmul.f32 0.01, %v1508_v13  ;;  %v1570_v17 = vpop.f32.mrf.mxu1  ;;  %1859 = vmatmul.bf16.vlgmr.msra.gmra.mxu3 %v1616_v12  ;;  %1917 = vmatmul.bf16.vlgmr.msra.gmra.mxu1 %v1616_v12  ;;  %v1569_v22 = vadd.f32 %v1568_v3, %v1540_v16 }
 0x423   : > { %2057 = vmatpush.bf16.msra.mxu2 %v3260_v9 }
 0x424   : > { %v1601_v19 = vmax.f32 %v1508_v13, %v1585_v15  ;;  %v1588_v27 = vmul.f32 0.01, %v1569_v22  ;;  %v3255_v13 = vld [vmem:[#allocation2 + $0x5c0] sm:$0xf] }
 0x425   : > { %v1481_v20 = vpop.f32.mrf.mxu2 }
 0x426   : > { %v1615_v21 = vpack.c.bf16 %v1601_v19, %v1599_v18  ;;  %v1482_v24 = vadd.f32 %v1481_v20, %v3827_v62  ;;  %v1604_v33 = vmax.f32 %v1569_v22, %v1588_v27 }
 0x427   : > { %v1541_v23 = vpop.f32.mrf.mxu0 }
 0x428   : > { %v1512_v25 = vpop.f32.mrf.mxu3  ;;  %v1542_v26 = vadd.f32 %v1541_v23, %v3824_v55  ;;  %1830 = vmatmul.bf16.vlgmr.msrb.gmra.mxu2 %v1615_v21  ;;  %1888 = vmatmul.bf16.vlgmr.msra.gmra.mxu0 %v1615_v21  ;;  %v1511_v30 = vadd.f32 %v1510_v14, %v1482_v24  ;;  %v3551_v14 = vld [vmem:[#allocation2 + $0x5c4] sm:$0xf0] }
 0x42a   : > { %v1571_v28 = vadd.f32 %v1570_v17, %v1542_v26  ;;  %v1573_v29 = vpop.f32.mrf.mxu1  ;;  %v1587_v37 = vmul.f32 0.01, %v1511_v30  ;;  %v3256_v17 = vor.u32 %v3551_v14, %v3255_v13 }
 0x42c   : > { %v1590_v31 = vmul.f32 0.01, %v1571_v28  ;;  %v1603_v44 = vmax.f32 %v1511_v30, %v1587_v37  ;;  %2058 = vmatpush.bf16.msra.mxu2 %v3256_v17 }
 0x42d   : > { %v1483_v32 = vpop.f32.mrf.mxu2 }
 0x42e   : > { %v1606_v34 = vmax.f32 %v1571_v28, %v1590_v31  ;;  %v1484_v35 = vadd.f32 %v1483_v32, %v3827_v62 }
 0x42f   : > { %v1544_v36 = vpop.f32.mrf.mxu0 }
 0x430   : > { %v1513_v38 = vadd.f32 %v1512_v25, %v1484_v35  ;;  %v1618_v40 = vpack.c.bf16 %v1606_v34, %v1604_v33  ;;  %v1515_v4 = vpop.f32.mrf.mxu3  ;;  %v1545_v43 = vadd.f32 %v1544_v36, %v3824_v55 }
 0x432   : > { %v1589_v41 = vmul.f32 0.01, %v1513_v38  ;;  %1864 = vmatmul.bf16.gmra.mxu3 %v1618_v40  ;;  %1922 = vmatmul.bf16.gmra.mxu1 %v1618_v40  ;;  %v1575_v46 = vpop.f32.mrf.mxu1  ;;  %v1574_v49 = vadd.f32 %v1573_v29, %v1545_v43 }
 0x434   : > { %v1605_v45 = vmax.f32 %v1513_v38, %v1589_v41  ;;  %v1592_v63 = vmul.f32 0.01, %v1574_v49 }
 0x435   : > { %v1486_v48 = vpop.f32.mrf.mxu2 }
 0x436   : > { %v1617_v50 = vpack.c.bf16 %v1605_v45, %v1603_v44  ;;  %v1487_v52 = vadd.f32 %v1486_v48, %v3827_v62  ;;  %v1608_v5 = vmax.f32 %v1574_v49, %v1592_v63  ;;  %v3251_v44 = vld [vmem:[#allocation2 + $0x5b0] sm:$0xf]  ;;  %v3550_v45 = vld [vmem:[#allocation2 + $0x5b4] sm:$0xf0]  ;;  %v3247_v48 = vld [vmem:[#allocation2 + $0x5a0] sm:$0xf] }
 0x437   : > { %v1546_v51 = vpop.f32.mrf.mxu0  ;;  %v3549_v49 = vld [vmem:[#allocation2 + $0x5a4] sm:$0xf0] }
 0x438   : > { %v1547_v53 = vadd.f32 %v1546_v51, %v3824_v55  ;;  %1835 = vmatmul.bf16.gmra.mxu2 %v1617_v50  ;;  %1893 = vmatmul.bf16.gmra.mxu0 %v1617_v50  ;;  %v1517_v1 = vpop.f32.mrf.mxu3  ;;  %v1516_v39 = vadd.f32 %v1515_v4, %v1487_v52  ;;  %v3248_v50 = vor.u32 %v3549_v49, %v3247_v48  ;;  %v3548_v51 = vld [vmem:[#allocation2 + $0x594] sm:$0xf0] }
 0x439   : > { %v1965_v49 = vld [vmem:[%s3857_s23 + $0x18] sm:$0xff] }
 0x43a   : > { %v1576_v0 = vadd.f32 %v1575_v46, %v1547_v53  ;;  %v1578_v8 = vpop.f32.mrf.mxu1  ;;  %v1591_v10 = vmul.f32 0.01, %v1516_v39  ;;  %v3252_v46 = vor.u32 %v3550_v45, %v3251_v44  ;;  %v3239_v53 = vld [vmem:[#allocation2 + $0x580] sm:$0xf]  ;;  %v1964_v44 = vld [vmem:[%s3857_s23 + $0x10] sm:$0xff] }
 0x43b   : > { %v3240_v58 = vor.u32 %v3547_v54, %v3239_v53 }
 0x43c   : > { %v1594_v47 = vmul.f32 0.01, %v1576_v0  ;;  %v1607_v18 = vmax.f32 %v1516_v39, %v1591_v10  ;;  %2059 = vmatpush.bf16.msra.mxu2 %v3252_v46 }
 0x43d   : > { %v1488_v3 = vpop.f32.mrf.mxu2 }
 0x43e   : > { %v1610_v6 = vmax.f32 %v1576_v0, %v1594_v47  ;;  %v1489_v7 = vadd.f32 %v1488_v3, %v3827_v62 }
 0x43f   : > { %v1549_v42 = vpop.f32.mrf.mxu0 }
 0x440   : > { %v1518_v11 = vadd.f32 %v1517_v1, %v1489_v7  ;;  %v1620_v12 = vpack.c.bf16 %v1610_v6, %v1608_v5  ;;  %v1550_v16 = vadd.f32 %v1549_v42, %v3824_v55  ;;  %v1520_v20 = vpop.f32.mrf.mxu3  ;;  %2060 = vmatpush.bf16.msra.mxu2 %v3248_v50 }
 0x442   : > { %v1593_v15 = vmul.f32 0.01, %v1518_v11  ;;  %1869 = vmatmul.bf16.gmra.mxu3 %v1620_v12  ;;  %1927 = vmatmul.bf16.gmra.mxu1 %v1620_v12  ;;  %v1579_v22 = vadd.f32 %v1578_v8, %v1550_v16  ;;  %v1580_v27 = vpop.f32.mrf.mxu1  ;;  %v1962_v16 = vld [vmem:[%s3857_s23] sm:$0xff] }
 0x444   : > { %v1609_v19 = vmax.f32 %v1518_v11, %v1593_v15  ;;  %v1596_v28 = vmul.f32 0.01, %v1579_v22  ;;  %v3859_v11 = vperm.slane %v3108_v57, 0 }
 0x445   : > { %v1491_v21 = vpop.f32.mrf.mxu2 }
 0x446   : > { %v1619_v23 = vpack.c.bf16 %v1609_v19, %v1607_v18  ;;  %v1492_v25 = vadd.f32 %v1491_v21, %v3827_v62  ;;  %v1612_v33 = vmax.f32 %v1579_v22, %v1596_v28 }
 0x447   : > { %v1551_v24 = vpop.f32.mrf.mxu0 }
 0x448   : > { %v1552_v26 = vadd.f32 %v1551_v24, %v3824_v55  ;;  %1840 = vmatmul.bf16.gmra.mxu2 %v1619_v23  ;;  %1898 = vmatmul.bf16.gmra.mxu0 %v1619_v23  ;;  %v1521_v30 = vadd.f32 %v1520_v20, %v1492_v25  ;;  %v1522_v36 = vpop.f32.mrf.mxu3  ;;  %v1963_v20 = vld [vmem:[%s3857_s23 + $0x8] sm:$0xff] }
 0x44a   : > { %v1581_v29 = vadd.f32 %v1580_v27, %v1552_v26  ;;  %v1595_v37 = vmul.f32 0.01, %v1521_v30 }
 0x44c   : > { %v1598_v31 = vmul.f32 0.01, %v1581_v29  ;;  %v1611_v55 = vmax.f32 %v1521_v30, %v1595_v37 }
 0x44d   : > { %v1493_v32 = vpop.f32.mrf.mxu2 }
 0x44e   : > { %v1614_v34 = vmax.f32 %v1581_v29, %v1598_v31  ;;  %v1494_v35 = vadd.f32 %v1493_v32, %v3827_v62  ;;  %v3243_v62 = vld [vmem:[#allocation2 + $0x590] sm:$0xf] }
 0x44f   : > { %v3244_v52 = vor.u32 %v3548_v51, %v3243_v62 }
 0x450   : > { %v1523_v38 = vadd.f32 %v1522_v36, %v1494_v35  ;;  %v1622_v40 = vpack.c.bf16 %v1614_v34, %v1612_v33 }
 0x451   : > { %2061 = vmatpush.bf16.msra.mxu2 %v3244_v52 }
 0x452   : > { %v1597_v4 = vmul.f32 0.01, %v1523_v38  ;;  %1874 = vmatmul.bf16.gmra.mxu3 %v1622_v40  ;;  %1932 = vmatmul.bf16.gmra.mxu1 %v1622_v40 }
 0x454   : > { %v1613_v41 = vmax.f32 %v1523_v38, %v1597_v4 }
 0x455   : > { %2062 = vmatpush.bf16.msra.mxu2 %v3240_v58 }
 0x456   : > { %v1621_v43 = vpack.c.bf16 %v1613_v41, %v1611_v55 }
 0x458   : > { %1845 = vmatmul.bf16.gmra.mxu2 %v1621_v43  ;;  %1903 = vmatmul.bf16.gmra.mxu0 %v1621_v43 }
 0x49f   : > { %v1918_v56 = vpop.f32.mrf.mxu1 }
 0x4a5   : > { %v1889_v63 = vpop.f32.mrf.mxu0  ;;  %v1860_v0 = vpop.f32.mrf.mxu3 }
 0x4a6   : > { %v1890_v1 = vadd.f32 %v1889_v63, %v3847_v59 }
 0x4a7   : > { %v1920_v60 = vpop.f32.mrf.mxu1 }
 0x4a8   : > { %v1919_v39 = vadd.f32 %v1918_v56, %v1890_v1 }
 0x4aa   : > { %v1938_v47 = vmul.f32 0.5, %v1919_v39 }
 0x4ab   : > { %v1831_v61 = vpop.f32.mrf.mxu2 }
 0x4ac   : > { %v1946_v3 = vmul.f32 1.442695, %v1938_v47  ;;  %v1832_v18 = vadd.f32 %v1831_v61, %v3859_v11 }
 0x4ad   : > { %v1891_v2 = vpop.f32.mrf.mxu0  ;;  %v1862_v7 = vpop.f32.mrf.mxu3 }
 0x4ae   : > { %v1892_v5 = vadd.f32 %v1891_v2, %v3847_v59  ;;  %3632 = vpow2.f32 %v1946_v3  ;;  %v1861_v26 = vadd.f32 %v1860_v0, %v1832_v18  ;;  %v1966_v18 = vld [vmem:[%s3857_s23 + $0x20] sm:$0xff] }
 0x4af   : > { %v1923_v6 = vpop.f32.mrf.mxu1 }
 0x4b0   : > { %v1921_v8 = vadd.f32 %v1920_v60, %v1892_v5  ;;  %v3299_v5 = vld [vmem:[#allocation2 + $0x670] sm:$0xf] }
 0x4b2   : > { %v1939_v42 = vmul.f32 0.5, %v1921_v8 }
 0x4b3   : > { %v1833_v9 = vpop.f32.mrf.mxu2 }
 0x4b4   : > { %v1948_v10 = vmul.f32 1.442695, %v1939_v42  ;;  %v3633_v15 = vpop.eup %3632  ;;  %v1834_v19 = vadd.f32 %v1833_v9, %v3859_v11  ;;  %v3561_v9 = vld [vmem:[#allocation2 + $0x664] sm:$0xf0] }
 0x4b5   : > { %v1894_v12 = vpop.f32.mrf.mxu0  ;;  %v1865_v21 = vpop.f32.mrf.mxu3  ;;  %v1970_v23 = vmul.f32 %v3633_v15, %v1962_v16  ;;  %v3291_v15 = vld [vmem:[#allocation2 + $0x650] sm:$0xf]  ;;  %v3560_v16 = vld [vmem:[#allocation2 + $0x654] sm:$0xf0] }
 0x4b6   : > { %3634 = vpow2.f32 %v1948_v10  ;;  %v1895_v13 = vadd.f32 %v1894_v12, %v3847_v59  ;;  %v1863_v27 = vadd.f32 %v1862_v7, %v1834_v19  ;;  %v3295_v7 = vld [vmem:[#allocation2 + $0x660] sm:$0xf] }
 0x4b7   : > { %v1925_v14 = vpop.f32.mrf.mxu1  ;;  %v1978_v32 = vadd.f32 %v1970_v23, %v1861_v26  ;;  %v1967_v23 = vld [vmem:[%s3857_s23 + $0x28] sm:$0xff] }
 0x4b8   : > { %v1924_v17 = vadd.f32 %v1923_v6, %v1895_v13  ;;  %v3562_v6 = vld [vmem:[#allocation2 + $0x674] sm:$0xf0] }
 0x4b9   : > { %v3300_v42 = vor.u32 %v3562_v6, %v3299_v5  ;;  %v3556_v5 = vld [vmem:[#allocation2 + $0x614] sm:$0xf0] }
 0x4ba   : > { %v1940_v22 = vmul.f32 0.5, %v1924_v17 }
 0x4bb   : > { %v1836_v24 = vpop.f32.mrf.mxu2  ;;  %2169 = vmatpush.bf16.msrb.mxu3 %v3300_v42 }
 0x4bc   : > { %v3635_v25 = vpop.eup %3634  ;;  %v1950_v30 = vmul.f32 1.442695, %v1940_v22  ;;  %v1837_v46 = vadd.f32 %v1836_v24, %v3859_v11 }
 0x4bd   : > { %v1971_v28 = vmul.f32 %v3635_v25, %v1963_v20  ;;  %v1896_v29 = vpop.f32.mrf.mxu0  ;;  %v1867_v40 = vpop.f32.mrf.mxu3  ;;  %v3292_v25 = vor.u32 %v3560_v16, %v3291_v15 }
 0x4be   : > { %v1897_v31 = vadd.f32 %v1896_v29, %v3847_v59  ;;  %3636 = vpow2.f32 %v1950_v30  ;;  %v1866_v54 = vadd.f32 %v1865_v21, %v1837_v46 }
 0x4bf   : > { %v1979_v33 = vadd.f32 %v1971_v28, %v1863_v27  ;;  %v1928_v36 = vpop.f32.mrf.mxu1  ;;  %v3287_v27 = vld [vmem:[#allocation2 + $0x640] sm:$0xf]  ;;  %v3559_v28 = vld [vmem:[#allocation2 + $0x644] sm:$0xf0] }
 0x4c0   : > { %v1926_v34 = vadd.f32 %v1925_v14, %v1897_v31  ;;  %v3296_v14 = vor.u32 %v3561_v9, %v3295_v7  ;;  %v3271_v7 = vld [vmem:[#allocation2 + $0x600] sm:$0xf]  ;;  %v2002_v9 = vld [vmem:[%s3909_s3 + $0x10] ss:$0 sm:$0xff] }
 0x4c1   : > { %v2003_v35 = vpack.c.bf16 %v1979_v33, %v1978_v32 }
 0x4c2   : > { %v1941_v37 = vmul.f32 0.5, %v1926_v34  ;;  %2170 = vmatpush.bf16.msrb.mxu3 %v3296_v14 }
 0x4c3   : > { %v1838_v38 = vpop.f32.mrf.mxu2  ;;  %2063 = vmatmul.bf16.vlgmr.msra.gmra.mxu2 %v2003_v35 }
 0x4c4   : > { %v1952_v4 = vmul.f32 1.442695, %v1941_v37  ;;  %v3637_v43 = vpop.eup %3636  ;;  %v1839_v48 = vadd.f32 %v1838_v38, %v3859_v11  ;;  %v3288_v37 = vor.u32 %v3559_v28, %v3287_v27 }
 0x4c5   : > { %v1899_v55 = vpop.f32.mrf.mxu0  ;;  %v1972_v62 = vmul.f32 %v3637_v43, %v1964_v44  ;;  %v1870_v63 = vpop.f32.mrf.mxu3 }
 0x4c6   : > { %3638 = vpow2.f32 %v1952_v4  ;;  %v1900_v41 = vadd.f32 %v1899_v55, %v3847_v59  ;;  %v1868_v56 = vadd.f32 %v1867_v40, %v1839_v48  ;;  %2171 = vmatpush.bf16.msrb.mxu3 %v3292_v25  ;;  %v3283_v55 = vld [vmem:[#allocation2 + $0x630] sm:$0xf] }
 0x4c7   : > { %v1930_v51 = vpop.f32.mrf.mxu1  ;;  %v1980_v60 = vadd.f32 %v1972_v62, %v1866_v54 }
 0x4c8   : > { %v1929_v45 = vadd.f32 %v1928_v36, %v1900_v41  ;;  %v3558_v41 = vld [vmem:[#allocation2 + $0x634] sm:$0xf0] }
 0x4c9   : > { %v3284_v48 = vor.u32 %v3558_v41, %v3283_v55  ;;  %v3319_v41 = vld [vmem:[#allocation2 + $0x6c0] sm:$0xf] }
 0x4ca   : > { %v1942_v50 = vmul.f32 0.5, %v1929_v45  ;;  %2172 = vmatpush.bf16.msrb.mxu3 %v3288_v37  ;;  %v3568_v37 = vld [vmem:[#allocation2 + $0x6d4] sm:$0xf0] }
 0x4cb   : > { %v1841_v52 = vpop.f32.mrf.mxu2 }
 0x4cc   : > { %v3639_v53 = vpop.eup %3638  ;;  %v1954_v0 = vmul.f32 1.442695, %v1942_v50  ;;  %v1842_v21 = vadd.f32 %v1841_v52, %v3859_v11  ;;  %v3557_v50 = vld [vmem:[#allocation2 + $0x624] sm:$0xf0] }
 0x4cd   : > { %v1973_v57 = vmul.f32 %v3639_v53, %v1965_v49  ;;  %v1901_v58 = vpop.f32.mrf.mxu0  ;;  %v1872_v19 = vpop.f32.mrf.mxu3  ;;  %v3279_v49 = vld [vmem:[#allocation2 + $0x620] sm:$0xf]  ;;  %v1968_v53 = vld [vmem:[%s3857_s23 + $0x30] sm:$0xff] }
 0x4ce   : > { %v1902_v1 = vadd.f32 %v1901_v58, %v3847_v59  ;;  %3640 = vpow2.f32 %v1954_v0  ;;  %v1871_v31 = vadd.f32 %v1870_v63, %v1842_v21  ;;  %2173 = vmatpush.bf16.msrb.mxu3 %v3284_v48 }
 0x4cf   : > { %v1981_v39 = vadd.f32 %v1973_v57, %v1868_v56  ;;  %v1933_v10 = vpop.f32.mrf.mxu1  ;;  %v1969_v57 = vld [vmem:[%s3857_s23 + $0x38] sm:$0xff] }
 0x4d0   : > { %v1931_v47 = vadd.f32 %v1930_v51, %v1902_v1  ;;  %v3280_v51 = vor.u32 %v3557_v50, %v3279_v49  ;;  %v3315_v49 = vld [vmem:[#allocation2 + $0x6b0] sm:$0xf]  ;;  %v3566_v50 = vld [vmem:[#allocation2 + $0x6b4] sm:$0xf0] }
 0x4d1   : > { %v2004_v61 = vpack.c.bf16 %v1981_v39, %v1980_v60 }
 0x4d2   : > { %v1943_v2 = vmul.f32 0.5, %v1931_v47  ;;  %2174 = vmatpush.bf16.msrb.mxu3 %v3280_v51  ;;  %v3316_v51 = vor.u32 %v3566_v50, %v3315_v49 }
 0x4d3   : > { %v1843_v3 = vpop.f32.mrf.mxu2  ;;  %2068 = vmatmul.bf16.gmra.mxu2 %v2004_v61 }
 0x4d4   : > { %v1956_v8 = vmul.f32 1.442695, %v1943_v2  ;;  %v3641_v17 = vpop.eup %3640  ;;  %v1844_v22 = vadd.f32 %v1843_v3, %v3859_v11  ;;  %v3275_v3 = vld [vmem:[#allocation2 + $0x610] sm:$0xf] }
 0x4d5   : > { %v1904_v12 = vpop.f32.mrf.mxu0  ;;  %v1974_v26 = vmul.f32 %v3641_v17, %v1966_v18  ;;  %v1875_v45 = vpop.f32.mrf.mxu3  ;;  %v3276_v6 = vor.u32 %v3556_v5, %v3275_v3  ;;  %v3303_v3 = vld [vmem:[#allocation2 + $0x680] sm:$0xf]  ;;  %v3563_v5 = vld [vmem:[#allocation2 + $0x684] sm:$0xf0] }
 0x4d6   : > { %3642 = vpow2.f32 %v1956_v8  ;;  %v1905_v13 = vadd.f32 %v1904_v12, %v3847_v59  ;;  %v1873_v32 = vadd.f32 %v1872_v19, %v1844_v22  ;;  %v3555_v8 = vld [vmem:[#allocation2 + $0x604] sm:$0xf0] }
 0x4d7   : > { %v1982_v38 = vadd.f32 %v1974_v26, %v1871_v31  ;;  %v1935_v4 = vpop.f32.mrf.mxu1  ;;  %2175 = vmatpush.bf16.msrb.mxu3 %v3276_v6  ;;  %v3272_v42 = vor.u32 %v3555_v8, %v3271_v7  ;;  %v3327_v31 = vld [vmem:[#allocation2 + $0x6e0] sm:$0xf]  ;;  %v3304_v6 = vor.u32 %v3563_v5, %v3303_v3  ;;  %v2120_v8 = vld [vmem:[%s3909_s3 + $0x11] ss:$0 sm:$0xff]  ;;  %v2234_v5 = vld [vmem:[%s3909_s3 + $0x12] ss:$0 sm:$0xff] }
 0x4d8   : > { %v1934_v20 = vadd.f32 %v1933_v10, %v1905_v13 }
 0x4da   : > { %v1944_v24 = vmul.f32 0.5, %v1934_v20 }
 0x4db   : > { %v1846_v30 = vpop.f32.mrf.mxu2  ;;  %2176 = vmatpush.bf16.msrb.mxu3 %v3272_v42 }
 0x4dc   : > { %v3643_v29 = vpop.eup %3642  ;;  %v1958_v35 = vmul.f32 1.442695, %v1944_v24  ;;  %v1847_v54 = vadd.f32 %v1846_v30, %v3859_v11  ;;  %v3570_v30 = vld [vmem:[#allocation2 + $0x6f4] sm:$0xf0] }
 0x4dd   : > { %v1975_v33 = vmul.f32 %v3643_v29, %v1967_v23  ;;  %v1906_v34 = vpop.f32.mrf.mxu0  ;;  %v1877_v0 = vpop.f32.mrf.mxu3  ;;  %v3331_v29 = vld [vmem:[#allocation2 + $0x6f0] sm:$0xf] }
 0x4de   : > { %v1907_v36 = vadd.f32 %v1906_v34, %v3847_v59  ;;  %3644 = vpow2.f32 %v1958_v35  ;;  %v1876_v1 = vadd.f32 %v1875_v45, %v1847_v54 }
 0x4df   : > { %v1983_v40 = vadd.f32 %v1975_v33, %v1873_v32  ;;  %v3332_v32 = vor.u32 %v3570_v30, %v3331_v29  ;;  %v3569_v33 = vld [vmem:[#allocation2 + $0x6e4] sm:$0xf0] }
 0x4e0   : > { %v1936_v43 = vadd.f32 %v1935_v4, %v1907_v36  ;;  %v3328_v34 = vor.u32 %v3569_v33, %v3327_v31  ;;  %v3323_v36 = vld [vmem:[#allocation2 + $0x6d0] sm:$0xf]  ;;  %v3577_v30 = vld [vmem:[#allocation2 + $0x764] sm:$0xf0] }
 0x4e1   : > { %v2005_v44 = vpack.c.bf16 %v1983_v40, %v1982_v38  ;;  %2283 = vmatpush.bf16.msrb.mxu0 %v3332_v32  ;;  %v3324_v40 = vor.u32 %v3568_v37, %v3323_v36  ;;  %v3355_v33 = vld [vmem:[#allocation2 + $0x750] sm:$0xf] }
 0x4e2   : > { %v1945_v46 = vmul.f32 0.5, %v1936_v43  ;;  %v3567_v43 = vld [vmem:[#allocation2 + $0x6c4] sm:$0xf0] }
 0x4e3   : > { %2073 = vmatmul.bf16.gmra.mxu2 %v2005_v44  ;;  %v1848_v62 = vpop.f32.mrf.mxu2  ;;  %v3320_v45 = vor.u32 %v3567_v43, %v3319_v41 }
 0x4e4   : > { %v1960_v59 = vmul.f32 1.442695, %v1945_v46  ;;  %v3645_v52 = vpop.eup %3644  ;;  %v1849_v56 = vadd.f32 %v1848_v62, %v3859_v11 }
 0x4e5   : > { %v1976_v58 = vmul.f32 %v3645_v52, %v1968_v53  ;;  %2284 = vmatpush.bf16.msrb.mxu0 %v3328_v34  ;;  %v3311_v52 = vld [vmem:[#allocation2 + $0x6a0] sm:$0xf]  ;;  %v3565_v53 = vld [vmem:[#allocation2 + $0x6a4] sm:$0xf0]  ;;  %v3576_v34 = vld [vmem:[#allocation2 + $0x754] sm:$0xf0] }
 0x4e6   : > { %3646 = vpow2.f32 %v1960_v59  ;;  %v1878_v60 = vadd.f32 %v1877_v0, %v1849_v56  ;;  %v3312_v54 = vor.u32 %v3565_v53, %v3311_v52  ;;  %v3356_v36 = vor.u32 %v3576_v34, %v3355_v33 }
 0x4e7   : > { %v1984_v47 = vadd.f32 %v1976_v58, %v1876_v1 }
 0x4e9   : > { %2285 = vmatpush.bf16.msrb.mxu0 %v3324_v40  ;;  %v3351_v40 = vld [vmem:[#allocation2 + $0x740] sm:$0xf] }
 0x4ec   : > { %v3647_v63 = vpop.eup %3646 }
 0x4ed   : > { %v1977_v39 = vmul.f32 %v3647_v63, %v1969_v57  ;;  %2286 = vmatpush.bf16.msrb.mxu0 %v3320_v45 }
 0x4ef   : > { %v1985_v61 = vadd.f32 %v1977_v39, %v1878_v60 }
 0x4f1   : > { %v2006_v2 = vpack.c.bf16 %v1985_v61, %v1984_v47  ;;  %2287 = vmatpush.bf16.msrb.mxu0 %v3316_v51  ;;  %v3307_v47 = vld [vmem:[#allocation2 + $0x690] sm:$0xf]  ;;  %v3564_v61 = vld [vmem:[#allocation2 + $0x694] sm:$0xf0] }
 0x4f3   : > { %2078 = vmatmul.bf16.gmra.mxu2 %v2006_v2  ;;  %v3308_v2 = vor.u32 %v3564_v61, %v3307_v47  ;;  %v3335_v47 = vld [vmem:[#allocation2 + $0x700] sm:$0xf]  ;;  %v3571_v61 = vld [vmem:[#allocation2 + $0x704] sm:$0xf0] }
 0x4f5   : > { %2288 = vmatpush.bf16.msrb.mxu0 %v3312_v54  ;;  %v3347_v54 = vld [vmem:[#allocation2 + $0x730] sm:$0xf] }
 0x4f9   : > { %2289 = vmatpush.bf16.msrb.mxu0 %v3308_v2  ;;  %v3336_v2 = vor.u32 %v3571_v61, %v3335_v47  ;;  %v2348_v61 = vld [vmem:[%s3909_s3 + $0x13] ss:$0 sm:$0xff] }
 0x4fd   : > { %2290 = vmatpush.bf16.msrb.mxu0 %v3304_v6 }
 0x546   : > { %v2064_v11 = vpop.f32.mrf.mxu2 }
 0x547   : > { %v2065_v10 = vadd.f32 %v2064_v11, %v2002_v9 }
 0x549   : > { %v2084_v13 = vmul.f32 0.01, %v2065_v10 }
 0x54b   : > { %v2092_v16 = vmax.f32 %v2065_v10, %v2084_v13 }
 0x54e   : > { %v2066_v12 = vpop.f32.mrf.mxu2 }
 0x54f   : > { %v2067_v14 = vadd.f32 %v2066_v12, %v2002_v9 }
 0x551   : > { %v2085_v15 = vmul.f32 0.01, %v2067_v14 }
 0x553   : > { %v2093_v17 = vmax.f32 %v2067_v14, %v2085_v15 }
 0x555   : > { %v2100_v18 = vpack.c.bf16 %v2093_v17, %v2092_v16 }
 0x556   : > { %v2069_v19 = vpop.f32.mrf.mxu2 }
 0x557   : > { %2177 = vmatmul.bf16.vlgmr.msrb.gmra.mxu3 %v2100_v18  ;;  %v2070_v20 = vadd.f32 %v2069_v19, %v2002_v9 }
 0x559   : > { %v2086_v22 = vmul.f32 0.01, %v2070_v20 }
 0x55b   : > { %v2094_v25 = vmax.f32 %v2070_v20, %v2086_v22 }
 0x55e   : > { %v2071_v21 = vpop.f32.mrf.mxu2 }
 0x55f   : > { %v2072_v23 = vadd.f32 %v2071_v21, %v2002_v9 }
 0x561   : > { %v2087_v24 = vmul.f32 0.01, %v2072_v23 }
 0x563   : > { %v2095_v26 = vmax.f32 %v2072_v23, %v2087_v24 }
 0x565   : > { %v2101_v27 = vpack.c.bf16 %v2095_v26, %v2094_v25  ;;  %v3363_v26 = vld [vmem:[#allocation2 + $0x770] sm:$0xf] }
 0x566   : > { %v2074_v28 = vpop.f32.mrf.mxu2 }
 0x567   : > { %2182 = vmatmul.bf16.gmra.mxu3 %v2101_v27  ;;  %v2075_v35 = vadd.f32 %v2074_v28, %v2002_v9  ;;  %v3578_v27 = vld [vmem:[#allocation2 + $0x774] sm:$0xf0]  ;;  %v3359_v28 = vld [vmem:[#allocation2 + $0x760] sm:$0xf] }
 0x568   : > { %v3364_v29 = vor.u32 %v3578_v27, %v3363_v26  ;;  %v3360_v31 = vor.u32 %v3577_v30, %v3359_v28  ;;  %v3585_v27 = vld [vmem:[#allocation2 + $0x7e4] sm:$0xf0]  ;;  %v3387_v30 = vld [vmem:[#allocation2 + $0x7d0] sm:$0xf] }
 0x569   : > { %v2088_v4 = vmul.f32 0.01, %v2075_v35 }
 0x56a   : > { %2397 = vmatpush.bf16.msra.mxu0 %v3364_v29  ;;  %3595 = vmatpush.bf16.msrb.mxu1 %v3364_v29 }
 0x56b   : > { %v2096_v46 = vmax.f32 %v2075_v35, %v2088_v4  ;;  %v3575_v4 = vld [vmem:[#allocation2 + $0x744] sm:$0xf0] }
 0x56c   : > { %v3352_v41 = vor.u32 %v3575_v4, %v3351_v40 }
 0x56e   : > { %v2076_v38 = vpop.f32.mrf.mxu2  ;;  %2398 = vmatpush.bf16.msra.mxu0 %v3360_v31  ;;  %3596 = vmatpush.bf16.msrb.mxu1 %v3360_v31  ;;  %v3584_v31 = vld [vmem:[#allocation2 + $0x7d4] sm:$0xf0] }
 0x56f   : > { %v2077_v55 = vadd.f32 %v2076_v38, %v2002_v9  ;;  %v3388_v33 = vor.u32 %v3584_v31, %v3387_v30 }
 0x571   : > { %v2089_v44 = vmul.f32 0.01, %v2077_v55 }
 0x572   : > { %2399 = vmatpush.bf16.msra.mxu0 %v3356_v36  ;;  %3597 = vmatpush.bf16.msrb.mxu1 %v3356_v36  ;;  %v3383_v36 = vld [vmem:[#allocation2 + $0x7c0] sm:$0xf] }
 0x573   : > { %v2097_v48 = vmax.f32 %v2077_v55, %v2089_v44 }
 0x575   : > { %v2102_v59 = vpack.c.bf16 %v2097_v48, %v2096_v46 }
 0x576   : > { %v2079_v62 = vpop.f32.mrf.mxu2  ;;  %2400 = vmatpush.bf16.msra.mxu0 %v3352_v41  ;;  %3598 = vmatpush.bf16.msrb.mxu1 %v3352_v41 }
 0x577   : > { %2187 = vmatmul.bf16.gmra.mxu3 %v2102_v59  ;;  %v2080_v56 = vadd.f32 %v2079_v62, %v2002_v9 }
 0x579   : > { %v2090_v58 = vmul.f32 0.01, %v2080_v56 }
 0x57b   : > { %v2098_v1 = vmax.f32 %v2080_v56, %v2090_v58  ;;  %v3574_v56 = vld [vmem:[#allocation2 + $0x734] sm:$0xf0]  ;;  %v3343_v58 = vld [vmem:[#allocation2 + $0x720] sm:$0xf] }
 0x57e   : > { %v2081_v57 = vpop.f32.mrf.mxu2 }
 0x57f   : > { %v2082_v63 = vadd.f32 %v2081_v57, %v2002_v9  ;;  %v3348_v57 = vor.u32 %v3574_v56, %v3347_v54  ;;  %v3375_v54 = vld [vmem:[#allocation2 + $0x7a0] sm:$0xf]  ;;  %v3581_v56 = vld [vmem:[#allocation2 + $0x7a4] sm:$0xf0] }
 0x581   : > { %v2091_v0 = vmul.f32 0.01, %v2082_v63  ;;  %2401 = vmatpush.bf16.msra.mxu0 %v3348_v57  ;;  %3599 = vmatpush.bf16.msrb.mxu1 %v3348_v57  ;;  %v3376_v57 = vor.u32 %v3581_v56, %v3375_v54 }
 0x583   : > { %v2099_v60 = vmax.f32 %v2082_v63, %v2091_v0  ;;  %v3573_v63 = vld [vmem:[#allocation2 + $0x724] sm:$0xf0] }
 0x584   : > { %v3344_v0 = vor.u32 %v3573_v63, %v3343_v58  ;;  %v3371_v58 = vld [vmem:[#allocation2 + $0x790] sm:$0xf]  ;;  %v3580_v63 = vld [vmem:[#allocation2 + $0x794] sm:$0xf0] }
 0x585   : > { %v2103_v39 = vpack.c.bf16 %v2099_v60, %v2098_v1  ;;  %v3339_v1 = vld [vmem:[#allocation2 + $0x710] sm:$0xf]  ;;  %v3572_v60 = vld [vmem:[#allocation2 + $0x714] sm:$0xf0] }
 0x586   : > { %2402 = vmatpush.bf16.msra.mxu0 %v3344_v0  ;;  %3600 = vmatpush.bf16.msrb.mxu1 %v3344_v0  ;;  %v3372_v0 = vor.u32 %v3580_v63, %v3371_v58 }
 0x587   : > { %2192 = vmatmul.bf16.gmra.mxu3 %v2103_v39  ;;  %v3340_v39 = vor.u32 %v3572_v60, %v3339_v1  ;;  %v3367_v1 = vld [vmem:[#allocation2 + $0x780] sm:$0xf]  ;;  %v3579_v60 = vld [vmem:[#allocation2 + $0x784] sm:$0xf0] }
 0x58a   : > { %2403 = vmatpush.bf16.msra.mxu0 %v3340_v39  ;;  %3601 = vmatpush.bf16.msrb.mxu1 %v3340_v39  ;;  %v3368_v39 = vor.u32 %v3579_v60, %v3367_v1 }
 0x58e   : > { %2404 = vmatpush.bf16.msra.mxu0 %v3336_v2  ;;  %3602 = vmatpush.bf16.msrb.mxu1 %v3336_v2 }
 0x5da   : > { %v2178_v7 = vpop.f32.mrf.mxu3 }
 0x5db   : > { %v2179_v42 = vadd.f32 %v2178_v7, %v2120_v8 }
 0x5dd   : > { %v2198_v9 = vmul.f32 0.01, %v2179_v42 }
 0x5df   : > { %v2206_v13 = vmax.f32 %v2179_v42, %v2198_v9 }
 0x5e2   : > { %v2180_v11 = vpop.f32.mrf.mxu3 }
 0x5e3   : > { %v2181_v10 = vadd.f32 %v2180_v11, %v2120_v8 }
 0x5e5   : > { %v2199_v12 = vmul.f32 0.01, %v2181_v10 }
 0x5e7   : > { %v2207_v14 = vmax.f32 %v2181_v10, %v2199_v12 }
 0x5e9   : > { %v2214_v15 = vpack.c.bf16 %v2207_v14, %v2206_v13 }
 0x5ea   : > { %v2183_v16 = vpop.f32.mrf.mxu3 }
 0x5eb   : > { %2291 = vmatmul.bf16.vlgmr.msrb.gmra.mxu0 %v2214_v15  ;;  %v2184_v17 = vadd.f32 %v2183_v16, %v2120_v8 }
 0x5ed   : > { %v2200_v19 = vmul.f32 0.01, %v2184_v17 }
 0x5ef   : > { %v2208_v22 = vmax.f32 %v2184_v17, %v2200_v19 }
 0x5f2   : > { %v2185_v18 = vpop.f32.mrf.mxu3 }
 0x5f3   : > { %v2186_v20 = vadd.f32 %v2185_v18, %v2120_v8 }
 0x5f5   : > { %v2201_v21 = vmul.f32 0.01, %v2186_v20 }
 0x5f7   : > { %v2209_v23 = vmax.f32 %v2186_v20, %v2201_v21 }
 0x5f9   : > { %v2215_v24 = vpack.c.bf16 %v2209_v23, %v2208_v22  ;;  %v3395_v23 = vld [vmem:[#allocation2 + $0x7f0] sm:$0xf] }
 0x5fa   : > { %v2188_v25 = vpop.f32.mrf.mxu3 }
 0x5fb   : > { %2296 = vmatmul.bf16.gmra.mxu0 %v2215_v24  ;;  %v2189_v32 = vadd.f32 %v2188_v25, %v2120_v8  ;;  %v3586_v24 = vld [vmem:[#allocation2 + $0x7f4] sm:$0xf0]  ;;  %v3391_v25 = vld [vmem:[#allocation2 + $0x7e0] sm:$0xf] }
 0x5fc   : > { %v3396_v26 = vor.u32 %v3586_v24, %v3395_v23  ;;  %v3392_v28 = vor.u32 %v3585_v27, %v3391_v25 }
 0x5fd   : > { %v2202_v37 = vmul.f32 0.01, %v2189_v32 }
 0x5fe   : > { %2511 = vmatpush.bf16.msrb.mxu2 %v3396_v26  ;;  %3603 = vmatpush.bf16.msra.mxu3 %v3396_v26 }
 0x5ff   : > { %v2210_v43 = vmax.f32 %v2189_v32, %v2202_v37  ;;  %v3583_v37 = vld [vmem:[#allocation2 + $0x7c4] sm:$0xf0] }
 0x600   : > { %v3384_v40 = vor.u32 %v3583_v37, %v3383_v36  ;;  %v2462_v37 = vld [vmem:[%s3909_s3 + $0x14] ss:$0 sm:$0xff] }
 0x602   : > { %v2190_v35 = vpop.f32.mrf.mxu3  ;;  %2512 = vmatpush.bf16.msrb.mxu2 %v3392_v28  ;;  %3604 = vmatpush.bf16.msra.mxu3 %v3392_v28 }
 0x603   : > { %v2191_v38 = vadd.f32 %v2190_v35, %v2120_v8 }
 0x605   : > { %v2203_v55 = vmul.f32 0.01, %v2191_v38 }
 0x606   : > { %2513 = vmatpush.bf16.msrb.mxu2 %v3388_v33  ;;  %3605 = vmatpush.bf16.msra.mxu3 %v3388_v33 }
 0x607   : > { %v2211_v44 = vmax.f32 %v2191_v38, %v2203_v55 }
 0x609   : > { %v2216_v45 = vpack.c.bf16 %v2211_v44, %v2210_v43 }
 0x60a   : > { %v2193_v46 = vpop.f32.mrf.mxu3  ;;  %2514 = vmatpush.bf16.msrb.mxu2 %v3384_v40  ;;  %3606 = vmatpush.bf16.msra.mxu3 %v3384_v40 }
 0x60b   : > { %2301 = vmatmul.bf16.gmra.mxu0 %v2216_v45  ;;  %v2194_v48 = vadd.f32 %v2193_v46, %v2120_v8 }
 0x60d   : > { %v2204_v50 = vmul.f32 0.01, %v2194_v48 }
 0x60f   : > { %v2212_v51 = vmax.f32 %v2194_v48, %v2204_v50 }
 0x612   : > { %v2195_v49 = vpop.f32.mrf.mxu3 }
 0x613   : > { %v2196_v59 = vadd.f32 %v2195_v49, %v2120_v8 }
 0x615   : > { %v2205_v62 = vmul.f32 0.01, %v2196_v59 }
 0x617   : > { %v2213_v52 = vmax.f32 %v2196_v59, %v2205_v62 }
 0x619   : > { %v2217_v53 = vpack.c.bf16 %v2213_v52, %v2212_v51  ;;  %v3379_v51 = vld [vmem:[#allocation2 + $0x7b0] sm:$0xf]  ;;  %v3582_v52 = vld [vmem:[#allocation2 + $0x7b4] sm:$0xf0] }
 0x61b   : > { %2306 = vmatmul.bf16.gmra.mxu0 %v2217_v53  ;;  %v3380_v53 = vor.u32 %v3582_v52, %v3379_v51 }
 0x61d   : > { %2515 = vmatpush.bf16.msrb.mxu2 %v3380_v53  ;;  %3607 = vmatpush.bf16.msra.mxu3 %v3380_v53 }
 0x621   : > { %2516 = vmatpush.bf16.msrb.mxu2 %v3376_v57  ;;  %3608 = vmatpush.bf16.msra.mxu3 %v3376_v57 }
 0x625   : > { %2517 = vmatpush.bf16.msrb.mxu2 %v3372_v0  ;;  %3609 = vmatpush.bf16.msra.mxu3 %v3372_v0 }
 0x629   : > { %2518 = vmatpush.bf16.msrb.mxu2 %v3368_v39  ;;  %3610 = vmatpush.bf16.msra.mxu3 %v3368_v39 }
 0x668   : > { %v2292_v3 = vpop.f32.mrf.mxu0 }
 0x669   : > { %v2293_v6 = vadd.f32 %v2292_v3, %v2234_v5 }
 0x66b   : > { %v2312_v8 = vmul.f32 0.01, %v2293_v6 }
 0x66d   : > { %v2320_v9 = vmax.f32 %v2293_v6, %v2312_v8 }
 0x670   : > { %v2294_v7 = vpop.f32.mrf.mxu0 }
 0x671   : > { %v2295_v42 = vadd.f32 %v2294_v7, %v2234_v5 }
 0x673   : > { %v2313_v11 = vmul.f32 0.01, %v2295_v42 }
 0x675   : > { %v2321_v10 = vmax.f32 %v2295_v42, %v2313_v11 }
 0x677   : > { %v2328_v12 = vpack.c.bf16 %v2321_v10, %v2320_v9 }
 0x678   : > { %v2297_v13 = vpop.f32.mrf.mxu0 }
 0x679   : > { %2405 = vmatmul.bf16.vlgmr.msra.gmra.mxu0 %v2328_v12  ;;  %v2298_v14 = vadd.f32 %v2297_v13, %v2234_v5 }
 0x67b   : > { %v2314_v16 = vmul.f32 0.01, %v2298_v14 }
 0x67d   : > { %v2322_v19 = vmax.f32 %v2298_v14, %v2314_v16 }
 0x680   : > { %v2299_v15 = vpop.f32.mrf.mxu0 }
 0x681   : > { %v2300_v17 = vadd.f32 %v2299_v15, %v2234_v5 }
 0x683   : > { %v2315_v18 = vmul.f32 0.01, %v2300_v17 }
 0x685   : > { %v2323_v20 = vmax.f32 %v2300_v17, %v2315_v18 }
 0x687   : > { %v2329_v21 = vpack.c.bf16 %v2323_v20, %v2322_v19 }
 0x688   : > { %v2302_v22 = vpop.f32.mrf.mxu0 }
 0x689   : > { %2410 = vmatmul.bf16.vlgmr.msrb.gmra.mxu1 %v2329_v21  ;;  %v2303_v29 = vadd.f32 %v2302_v22, %v2234_v5 }
 0x68b   : > { %v2316_v34 = vmul.f32 0.01, %v2303_v29 }
 0x68d   : > { %v2324_v4 = vmax.f32 %v2303_v29, %v2316_v34 }
 0x690   : > { %v2304_v32 = vpop.f32.mrf.mxu0 }
 0x691   : > { %v2305_v35 = vadd.f32 %v2304_v32, %v2234_v5 }
 0x693   : > { %v2317_v38 = vmul.f32 0.01, %v2305_v35 }
 0x695   : > { %v2325_v55 = vmax.f32 %v2305_v35, %v2317_v38 }
 0x697   : > { %v2330_v41 = vpack.c.bf16 %v2325_v55, %v2324_v4 }
 0x698   : > { %v2307_v43 = vpop.f32.mrf.mxu0 }
 0x699   : > { %2415 = vmatmul.bf16.gmra.mxu1 %v2330_v41  ;;  %v2308_v44 = vadd.f32 %v2307_v43, %v2234_v5 }
 0x69b   : > { %v2318_v46 = vmul.f32 0.01, %v2308_v44 }
 0x69d   : > { %v2326_v50 = vmax.f32 %v2308_v44, %v2318_v46 }
 0x6a0   : > { %v2309_v45 = vpop.f32.mrf.mxu0 }
 0x6a1   : > { %v2310_v48 = vadd.f32 %v2309_v45, %v2234_v5 }
 0x6a3   : > { %v2319_v49 = vmul.f32 0.01, %v2310_v48 }
 0x6a5   : > { %v2327_v59 = vmax.f32 %v2310_v48, %v2319_v49 }
 0x6a7   : > { %v2331_v62 = vpack.c.bf16 %v2327_v59, %v2326_v50 }
 0x6a9   : > { %2420 = vmatmul.bf16.gmra.mxu1 %v2331_v62 }
 0x6f6   : > { %v2406_v47 = vpop.f32.mrf.mxu0 }
 0x6f7   : > { %v2407_v2 = vadd.f32 %v2406_v47, %v2348_v61 }
 0x6f9   : > { %v2426_v5 = vmul.f32 0.01, %v2407_v2 }
 0x6fb   : > { %v2434_v8 = vmax.f32 %v2407_v2, %v2426_v5 }
 0x6fe   : > { %v2408_v3 = vpop.f32.mrf.mxu0 }
 0x6ff   : > { %v2409_v6 = vadd.f32 %v2408_v3, %v2348_v61 }
 0x701   : > { %v2427_v7 = vmul.f32 0.01, %v2409_v6 }
 0x703   : > { %v2435_v42 = vmax.f32 %v2409_v6, %v2427_v7 }
 0x705   : > { %v2442_v11 = vpack.c.bf16 %v2435_v42, %v2434_v8 }
 0x706   : > { %v2411_v9 = vpop.f32.mrf.mxu1 }
 0x707   : > { %2519 = vmatmul.bf16.vlgmr.msrb.gmra.mxu2 %v2442_v11  ;;  %v2412_v10 = vadd.f32 %v2411_v9, %v2348_v61 }
 0x709   : > { %v2428_v13 = vmul.f32 0.01, %v2412_v10 }
 0x70b   : > { %v2436_v16 = vmax.f32 %v2412_v10, %v2428_v13 }
 0x70e   : > { %v2413_v12 = vpop.f32.mrf.mxu1 }
 0x70f   : > { %v2414_v14 = vadd.f32 %v2413_v12, %v2348_v61 }
 0x711   : > { %v2429_v15 = vmul.f32 0.01, %v2414_v14 }
 0x713   : > { %v2437_v17 = vmax.f32 %v2414_v14, %v2429_v15 }
 0x715   : > { %v2443_v18 = vpack.c.bf16 %v2437_v17, %v2436_v16 }
 0x716   : > { %v2416_v19 = vpop.f32.mrf.mxu1 }
 0x717   : > { %2524 = vmatmul.bf16.gmra.mxu2 %v2443_v18  ;;  %v2417_v20 = vadd.f32 %v2416_v19, %v2348_v61 }
 0x719   : > { %v2430_v22 = vmul.f32 0.01, %v2417_v20 }
 0x71b   : > { %v2438_v25 = vmax.f32 %v2417_v20, %v2430_v22 }
 0x71e   : > { %v2418_v21 = vpop.f32.mrf.mxu1 }
 0x71f   : > { %v2419_v23 = vadd.f32 %v2418_v21, %v2348_v61 }
 0x721   : > { %v2431_v24 = vmul.f32 0.01, %v2419_v23 }
 0x723   : > { %v2439_v26 = vmax.f32 %v2419_v23, %v2431_v24 }
 0x725   : > { %v2444_v27 = vpack.c.bf16 %v2439_v26, %v2438_v25 }
 0x726   : > { %v2421_v28 = vpop.f32.mrf.mxu1 }
 0x727   : > { %2529 = vmatmul.bf16.gmra.mxu2 %v2444_v27  ;;  %v2422_v29 = vadd.f32 %v2421_v28, %v2348_v61 }
 0x729   : > { %v2432_v31 = vmul.f32 0.01, %v2422_v29 }
 0x72b   : > { %v2440_v34 = vmax.f32 %v2422_v29, %v2432_v31 }
 0x72e   : > { %v2423_v30 = vpop.f32.mrf.mxu1 }
 0x72f   : > { %v2424_v32 = vadd.f32 %v2423_v30, %v2348_v61 }
 0x731   : > { %v2433_v33 = vmul.f32 0.01, %v2424_v32 }
 0x733   : > { %v2441_v35 = vmax.f32 %v2424_v32, %v2433_v33 }
 0x735   : > { %v2445_v36 = vpack.c.bf16 %v2441_v35, %v2440_v34 }
 0x737   : > { %2534 = vmatmul.bf16.vlgmr.msra.gmra.mxu3 %v2445_v36 }
 0x78a   : > { %v2520_v38 = vpop.f32.mrf.mxu2 }
 0x78b   : > { %v2521_v40 = vadd.f32 %v2520_v38, %v2462_v37 }
 0x78d   : > { %2540 = vst [vmem:[%s238_s11] sm:$0xff] %v2521_v40 }
 0x792   : > { %v2522_v4 = vpop.f32.mrf.mxu2 }
 0x793   : > { %v2523_v55 = vadd.f32 %v2522_v4, %v2462_v37 }
 0x795   : > { %2541 = vst [vmem:[%s238_s11 + $0x8] sm:$0xff] %v2523_v55 }
 0x79a   : > { %v2525_v41 = vpop.f32.mrf.mxu2 }
 0x79b   : > { %v2526_v43 = vadd.f32 %v2525_v41, %v2462_v37 }
 0x79d   : > { %2542 = vst [vmem:[%s238_s11 + $0x10] sm:$0xff] %v2526_v43 }
 0x7a2   : > { %v2527_v44 = vpop.f32.mrf.mxu2 }
 0x7a3   : > { %v2528_v45 = vadd.f32 %v2527_v44, %v2462_v37 }
 0x7a5   : > { %2543 = vst [vmem:[%s238_s11 + $0x18] sm:$0xff] %v2528_v45 }
 0x7aa   : > { %v2530_v46 = vpop.f32.mrf.mxu2 }
 0x7ab   : > { %v2531_v48 = vadd.f32 %v2530_v46, %v2462_v37 }
 0x7ad   : > { %2544 = vst [vmem:[%s238_s11 + $0x20] sm:$0xff] %v2531_v48 }
 0x7b2   : > { %v2532_v49 = vpop.f32.mrf.mxu2 }
 0x7b3   : > { %v2533_v50 = vadd.f32 %v2532_v49, %v2462_v37 }
 0x7b5   : > { %2545 = vst [vmem:[%s238_s11 + $0x28] sm:$0xff] %v2533_v50 }
 0x7ba   : > { %v2535_v59 = vpop.f32.mrf.mxu3 }
 0x7bb   : > { %v2536_v62 = vadd.f32 %v2535_v59, %v2462_v37 }
 0x7bd   : > { %2546 = vst [vmem:[%s238_s11 + $0x30] sm:$0xff] %v2536_v62 }
 0x7c2   : > { %v2537_v51 = vpop.f32.mrf.mxu3 }
 0x7c3   : > { %v2538_v52 = vadd.f32 %v2537_v51, %v2462_v37 }
 0x7c5   : > { %2547 = vst [vmem:[%s238_s11 + $0x38] sm:$0xff] %v2538_v52 }
 0x7c6 PF: > { %s15_s15 = sadd.s32 1, %s3688_s15  }
 0x7c7   : > { %p12_p7 = scmp.ge.s32.totalorder %s15_s15, 4  }
 0x7c9   :  { %14 = sbr.rel (!%p12_p7) target bundleno = 1 (0x1), region = 78 }
 0x7ce   :  { %2570 = vsyncpa [#allocation3], 1 }
 0x7cf   :  { %2572 = vsyncpa [#allocation3 + $0x1], 1 }

</bundles_post_ra>
